<compile_context>
chip_gen: v7x
topology: tpu7x:2x2x1
jax: 0.10.0
libtpu: 0.0.40
codegen_flags: <defaults>
</compile_context>

<pallas_src>
import math

import jax
import jax.numpy as jnp
from jax.experimental import pallas as pl
from jax.experimental.pallas import tpu as pltpu

# Native (PyTorch) sizes.
IN_DIM = 729
HID_DIM = 200
LATENT_DIM = 16

# Lane-padded sizes (multiples of 128).
IN_PAD = 768      # 6 * 128
HID_PAD = 256     # 2 * 128
LAT_PAD = 128     # 1 * 128


def _round_up(n, m):
    return ((n + m - 1) // m) * m


def _vae_kernel(x_ref, w1_ref, b1_ref, w2_ref, b2_ref, w3_ref, b3_ref,
                w4_ref, b4_ref, eps_ref,
                recon_ref, mu_ref, logvar_ref):
    wdt = w1_ref.dtype  # bfloat16

    # ---- encode: h1 = relu(fc1(x)) ----
    h1 = jnp.dot(x_ref[...], w1_ref[...], preferred_element_type=jnp.float32)
    h1 = jnp.maximum(h1 + b1_ref[...], 0.0)

    # ---- fused fc21 | fc22 -> [TB, 2*LAT_PAD] (mu in cols [0:128), logvar in [128:256)) ----
    ml = jnp.dot(h1.astype(wdt), w2_ref[...], preferred_element_type=jnp.float32)
    ml = ml + b2_ref[...]
    mu = ml[:, :LAT_PAD]
    logvar = ml[:, LAT_PAD:]

    # ---- reparameterize: z = mu + eps * exp(0.5*logvar) (f32 elementwise, EUP exp) ----
    std = jnp.exp(0.5 * logvar)
    z = mu + eps_ref[...] * std

    # ---- decode: sigmoid(fc4(relu(fc3(z)))) ----
    h3 = jnp.dot(z.astype(wdt), w3_ref[...], preferred_element_type=jnp.float32)
    h3 = jnp.maximum(h3 + b3_ref[...], 0.0)
    logits = jnp.dot(h3.astype(wdt), w4_ref[...], preferred_element_type=jnp.float32)
    logits = logits + b4_ref[...]

    recon_ref[...] = jax.nn.sigmoid(logits)
    mu_ref[...] = mu
    logvar_ref[...] = logvar


def vae_forward(x, packed, eps, *, batch_tile=256):
    """x: [B, 729] f32, eps: [B, latent] f32, packed: output of pack_params()."""
    B, in_dim = x.shape
    latent = eps.shape[1]

    # Batch tile: multiple of 8 sublanes; 256 rows keeps 2x-buffered tiles + ~1 MB
    # resident bf16 weights far under the 32 MiB scoped-VMEM default (safe on v7x's
    # halved VMEM too).
    TB = min(batch_tile, _round_up(B, 8))
    B_pad = _round_up(B, TB)
    n_tiles = B_pad // TB

    # Host-side zero-padding to lane-dense shapes (done once per call, outside the kernel).
    x_p = jnp.zeros((B_pad, IN_PAD), jnp.bfloat16).at[:B, :in_dim].set(
        x.astype(jnp.bfloat16))
    eps_p = jnp.zeros((B_pad, LAT_PAD), jnp.float32).at[:B, :latent].set(eps)

    resident = lambda shape: pl.BlockSpec(shape, lambda i: (0, 0))
    in_specs = [
        pl.BlockSpec((TB, IN_PAD), lambda i: (i, 0)),        # x tile
        resident((IN_PAD, HID_PAD)),                         # w1
        resident((1, HID_PAD)),                              # b1
        resident((HID_PAD, 2 * LAT_PAD)),                    # w2 (fused fc21|fc22)
        resident((1, 2 * LAT_PAD)),                          # b2
        resident((LAT_PAD, HID_PAD)),                        # w3
        resident((1, HID_PAD)),                              # b3
        resident((HID_PAD, IN_PAD)),                         # w4
        resident((1, IN_PAD)),                               # b4
        pl.BlockSpec((TB, LAT_PAD), lambda i: (i, 0)),       # eps tile
    ]
    out_specs = (
        pl.BlockSpec((TB, IN_PAD), lambda i: (i, 0)),        # recon
        pl.BlockSpec((TB, LAT_PAD), lambda i: (i, 0)),       # mu
        pl.BlockSpec((TB, LAT_PAD), lambda i: (i, 0)),       # logvar
    )
    out_shapes = (
        jax.ShapeDtypeStruct((B_pad, IN_PAD), jnp.float32),
        jax.ShapeDtypeStruct((B_pad, LAT_PAD), jnp.float32),
        jax.ShapeDtypeStruct((B_pad, LAT_PAD), jnp.float32),
    )

    recon, mu, logvar = pl.pallas_call(
        _vae_kernel,
        out_shape=out_shapes,
        grid=(n_tiles,),
        in_specs=in_specs,
        out_specs=out_specs,
        compiler_params=pltpu.CompilerParams(
            dimension_semantics=("parallel",)),
    )(x_p,
      packed["w1"], packed["b1"],
      packed["w2"], packed["b2"],
      packed["w3"], packed["b3"],
      packed["w4"], packed["b4"],
      eps_p)

    return (recon[:B, :in_dim], mu[:B, :latent], logvar[:B, :latent])


def init_params(key, latent_dim):
    """Native-shape params mimicking PyTorch nn.Linear default init (uniform +-1/sqrt(fan_in)).

    Weights stored as [in_features, out_features] (transpose of PyTorch), biases as [1, out]."""
    def linear(key, fan_in, fan_out):
        kw, kb = jax.random.split(key)
        bound = 1.0 / math.sqrt(fan_in)
        w = jax.random.uniform(kw, (fan_in, fan_out), jnp.float32, -bound, bound)
        b = jax.random.uniform(kb, (1, fan_out), jnp.float32, -bound, bound)
        return w, b

    k1, k21, k22, k3, k4 = jax.random.split(key, 5)
    w1, b1 = linear(k1, IN_DIM, HID_DIM)
    w21, b21 = linear(k21, HID_DIM, latent_dim)
    w22, b22 = linear(k22, HID_DIM, latent_dim)
    w3, b3 = linear(k3, latent_dim, HID_DIM)
    w4, b4 = linear(k4, HID_DIM, IN_DIM)
    return dict(w1=w1, b1=b1, w21=w21, b21=b21, w22=w22, b22=b22,
                w3=w3, b3=b3, w4=w4, b4=b4)


def pack_params(params, latent_dim, weight_dtype=jnp.bfloat16):
    """Zero-pad to lane-dense shapes, fuse fc21/fc22 into one head, cast weights to bf16."""
    def pad2(a, rows, cols):
        return jnp.pad(a, ((0, rows - a.shape[0]), (0, cols - a.shape[1])))

    w1 = pad2(params["w1"], IN_PAD, HID_PAD).astype(weight_dtype)
    b1 = pad2(params["b1"], 1, HID_PAD)

    # Fused mu/logvar head: cols [0:latent) = fc21, cols [LAT_PAD:LAT_PAD+latent) = fc22.
    w2 = jnp.zeros((HID_PAD, 2 * LAT_PAD), jnp.float32)
    w2 = w2.at[:HID_DIM, :latent_dim].set(params["w21"])
    w2 = w2.at[:HID_DIM, LAT_PAD:LAT_PAD + latent_dim].set(params["w22"])
    w2 = w2.astype(weight_dtype)
    b2 = jnp.zeros((1, 2 * LAT_PAD), jnp.float32)
    b2 = b2.at[:, :latent_dim].set(params["b21"])
    b2 = b2.at[:, LAT_PAD:LAT_PAD + latent_dim].set(params["b22"])

    w3 = pad2(params["w3"], LAT_PAD, HID_PAD).astype(weight_dtype)
    b3 = pad2(params["b3"], 1, HID_PAD)
    w4 = pad2(params["w4"], HID_PAD, IN_PAD).astype(weight_dtype)
    b4 = pad2(params["b4"], 1, IN_PAD)

    return dict(w1=w1, b1=b1, w2=w2, b2=b2, w3=w3, b3=b3, w4=w4, b4=b4)


def _reference(x, params, eps, weight_dtype=jnp.bfloat16):
    """Pure-JAX reference with the same bf16-weight / f32-accumulate precision as the kernel."""
    wd = lambda a: a.astype(weight_dtype)
    xb = x.astype(weight_dtype)
    h1 = jnp.maximum(
        jnp.dot(xb, wd(params["w1"]), preferred_element_type=jnp.float32) + params["b1"], 0.0)
    h1b = h1.astype(weight_dtype)
    mu = jnp.dot(h1b, wd(params["w21"]), preferred_element_type=jnp.float32) + params["b21"]
    logvar = jnp.dot(h1b, wd(params["w22"]), preferred_element_type=jnp.float32) + params["b22"]
    z = (mu + eps * jnp.exp(0.5 * logvar)).astype(weight_dtype)
    h3 = jnp.maximum(
        jnp.dot(z, wd(params["w3"]), preferred_element_type=jnp.float32) + params["b3"], 0.0)
    h3b = h3.astype(weight_dtype)
    recon = jax.nn.sigmoid(
        jnp.dot(h3b, wd(params["w4"]), preferred_element_type=jnp.float32) + params["b4"])
    return recon, mu, logvar


if __name__ == "__main__":
    key = jax.random.PRNGKey(0)
    k_params, k_x, k_eps = jax.random.split(key, 3)

    B = 8
    params = init_params(k_params, LATENT_DIM)
    packed = pack_params(params, LATENT_DIM)

    # Original input could be e.g. (B, 27, 27); forward flattens to (B, 729).
    x_img = jax.random.normal(k_x, (B, 27, 27), jnp.float32)
    x = x_img.reshape(-1, IN_DIM)

    # Reparameterization noise (torch.randn_like(std)) supplied deterministically.
    eps = jax.random.normal(k_eps, (B, LATENT_DIM), jnp.float32)

    recon, mu, logvar = vae_forward(x, packed, eps)
    jax.block_until_ready((recon, mu, logvar))

    recon_ref, mu_ref, logvar_ref = _reference(x, params, eps)
    assert recon.shape == (B, IN_DIM) and mu.shape == (B, LATENT_DIM)
    assert jnp.allclose(recon, recon_ref, atol=1e-3, rtol=1e-3), "recon mismatch"
    assert jnp.allclose(mu, mu_ref, atol=1e-3, rtol=1e-3), "mu mismatch"
    assert jnp.allclose(logvar, logvar_ref, atol=1e-3, rtol=1e-3), "logvar mismatch"

    print("KERNEL_OK")
</pallas_src>

<mosaic_0001>
module attributes {stable_mosaic.version = 11 : i64} {
  func.func @_vae_kernel(%arg0: i32, %arg1: memref<8x768xbf16, #tpu.memory_space<vmem>>, %arg2: memref<768x256xbf16, #tpu.memory_space<vmem>>, %arg3: memref<1x256xf32, #tpu.memory_space<vmem>>, %arg4: memref<256x256xbf16, #tpu.memory_space<vmem>>, %arg5: memref<1x256xf32, #tpu.memory_space<vmem>>, %arg6: memref<128x256xbf16, #tpu.memory_space<vmem>>, %arg7: memref<1x256xf32, #tpu.memory_space<vmem>>, %arg8: memref<256x768xbf16, #tpu.memory_space<vmem>>, %arg9: memref<1x768xf32, #tpu.memory_space<vmem>>, %arg10: memref<8x128xf32, #tpu.memory_space<vmem>>, %arg11: memref<8x768xf32, #tpu.memory_space<vmem>>, %arg12: memref<8x128xf32, #tpu.memory_space<vmem>>, %arg13: memref<8x128xf32, #tpu.memory_space<vmem>>) attributes {dimension_semantics = [#tpu.dimension_semantics<parallel>], iteration_bounds = array<i64: 1>, scalar_prefetch = 0 : i64, scratch_operands = 0 : i64, tpu.core_type = #tpu.core_type<tc>, window_params = [{transform_indices = @transform_0, window_bounds = array<i64: 8, 768>}, {pipeline_mode = #tpu.pipeline_mode<synchronous>, transform_indices = @transform_1, window_bounds = array<i64: 768, 256>}, {pipeline_mode = #tpu.pipeline_mode<synchronous>, transform_indices = @transform_2, window_bounds = array<i64: 1, 256>}, {pipeline_mode = #tpu.pipeline_mode<synchronous>, transform_indices = @transform_3, window_bounds = array<i64: 256, 256>}, {pipeline_mode = #tpu.pipeline_mode<synchronous>, transform_indices = @transform_4, window_bounds = array<i64: 1, 256>}, {pipeline_mode = #tpu.pipeline_mode<synchronous>, transform_indices = @transform_5, window_bounds = array<i64: 128, 256>}, {pipeline_mode = #tpu.pipeline_mode<synchronous>, transform_indices = @transform_6, window_bounds = array<i64: 1, 256>}, {pipeline_mode = #tpu.pipeline_mode<synchronous>, transform_indices = @transform_7, window_bounds = array<i64: 256, 768>}, {pipeline_mode = #tpu.pipeline_mode<synchronous>, transform_indices = @transform_8, window_bounds = array<i64: 1, 768>}, {transform_indices = @transform_9, window_bounds = array<i64: 8, 128>}, {transform_indices = @transform_10, window_bounds = array<i64: 8, 768>}, {transform_indices = @transform_11, window_bounds = array<i64: 8, 128>}, {transform_indices = @transform_12, window_bounds = array<i64: 8, 128>}]} {
    %c0 = arith.constant 0 : index
    %c0_0 = arith.constant 0 : index
    %0 = vector.load %arg1[%c0, %c0_0] : memref<8x768xbf16, #tpu.memory_space<vmem>>, vector<8x768xbf16>
    %c0_1 = arith.constant 0 : index
    %c0_2 = arith.constant 0 : index
    %1 = vector.load %arg2[%c0_1, %c0_2] : memref<768x256xbf16, #tpu.memory_space<vmem>>, vector<768x256xbf16>
    %cst = arith.constant dense<0.000000e+00> : vector<8x256xf32>
    %2 = tpu.matmul %0, %1, %cst {dimension_numbers = #tpu.dot_dimension_numbers<[1], [0], [0], [1], [0, 0, 1, 1], [], []>} : vector<8x768xbf16>, vector<768x256xbf16>, vector<8x256xf32> -> vector<8x256xf32>
    %c0_3 = arith.constant 0 : index
    %c0_4 = arith.constant 0 : index
    %3 = vector.load %arg3[%c0_3, %c0_4] : memref<1x256xf32, #tpu.memory_space<vmem>>, vector<1x256xf32>
    %4 = vector.broadcast %3 : vector<1x256xf32> to vector<8x256xf32>
    %5 = arith.addf %2, %4 : vector<8x256xf32>
    %cst_5 = arith.constant 0.000000e+00 : f32
    %6 = vector.broadcast %cst_5 : f32 to vector<8x256xf32>
    %7 = arith.maximumf %5, %6 : vector<8x256xf32>
    %8 = arith.truncf %7 : vector<8x256xf32> to vector<8x256xbf16>
    %c0_6 = arith.constant 0 : index
    %c0_7 = arith.constant 0 : index
    %9 = vector.load %arg4[%c0_6, %c0_7] : memref<256x256xbf16, #tpu.memory_space<vmem>>, vector<256x256xbf16>
    %cst_8 = arith.constant dense<0.000000e+00> : vector<8x256xf32>
    %10 = tpu.matmul %8, %9, %cst_8 {dimension_numbers = #tpu.dot_dimension_numbers<[1], [0], [0], [1], [0, 0, 1, 1], [], []>} : vector<8x256xbf16>, vector<256x256xbf16>, vector<8x256xf32> -> vector<8x256xf32>
    %c0_9 = arith.constant 0 : index
    %c0_10 = arith.constant 0 : index
    %11 = vector.load %arg5[%c0_9, %c0_10] : memref<1x256xf32, #tpu.memory_space<vmem>>, vector<1x256xf32>
    %12 = vector.broadcast %11 : vector<1x256xf32> to vector<8x256xf32>
    %13 = arith.addf %10, %12 : vector<8x256xf32>
    %14 = vector.extract_strided_slice %13 {offsets = [0, 0], sizes = [8, 128], strides = [1, 1]} : vector<8x256xf32> to vector<8x128xf32>
    %15 = vector.extract_strided_slice %13 {offsets = [0, 128], sizes = [8, 128], strides = [1, 1]} : vector<8x256xf32> to vector<8x128xf32>
    %cst_11 = arith.constant 5.000000e-01 : f32
    %16 = vector.broadcast %cst_11 : f32 to vector<8x128xf32>
    %17 = arith.mulf %16, %15 : vector<8x128xf32>
    %18 = math.exp %17 : vector<8x128xf32>
    %c0_12 = arith.constant 0 : index
    %c0_13 = arith.constant 0 : index
    %19 = vector.load %arg10[%c0_12, %c0_13] : memref<8x128xf32, #tpu.memory_space<vmem>>, vector<8x128xf32>
    %20 = arith.mulf %19, %18 : vector<8x128xf32>
    %21 = arith.addf %14, %20 : vector<8x128xf32>
    %22 = arith.truncf %21 : vector<8x128xf32> to vector<8x128xbf16>
    %c0_14 = arith.constant 0 : index
    %c0_15 = arith.constant 0 : index
    %23 = vector.load %arg6[%c0_14, %c0_15] : memref<128x256xbf16, #tpu.memory_space<vmem>>, vector<128x256xbf16>
    %cst_16 = arith.constant dense<0.000000e+00> : vector<8x256xf32>
    %24 = tpu.matmul %22, %23, %cst_16 {dimension_numbers = #tpu.dot_dimension_numbers<[1], [0], [0], [1], [0, 0, 1, 1], [], []>} : vector<8x128xbf16>, vector<128x256xbf16>, vector<8x256xf32> -> vector<8x256xf32>
    %c0_17 = arith.constant 0 : index
    %c0_18 = arith.constant 0 : index
    %25 = vector.load %arg7[%c0_17, %c0_18] : memref<1x256xf32, #tpu.memory_space<vmem>>, vector<1x256xf32>
    %26 = vector.broadcast %25 : vector<1x256xf32> to vector<8x256xf32>
    %27 = arith.addf %24, %26 : vector<8x256xf32>
    %cst_19 = arith.constant 0.000000e+00 : f32
    %28 = vector.broadcast %cst_19 : f32 to vector<8x256xf32>
    %29 = arith.maximumf %27, %28 : vector<8x256xf32>
    %30 = arith.truncf %29 : vector<8x256xf32> to vector<8x256xbf16>
    %c0_20 = arith.constant 0 : index
    %c0_21 = arith.constant 0 : index
    %31 = vector.load %arg8[%c0_20, %c0_21] : memref<256x768xbf16, #tpu.memory_space<vmem>>, vector<256x768xbf16>
    %cst_22 = arith.constant dense<0.000000e+00> : vector<8x768xf32>
    %32 = tpu.matmul %30, %31, %cst_22 {dimension_numbers = #tpu.dot_dimension_numbers<[1], [0], [0], [1], [0, 0, 1, 1], [], []>} : vector<8x256xbf16>, vector<256x768xbf16>, vector<8x768xf32> -> vector<8x768xf32>
    %c0_23 = arith.constant 0 : index
    %c0_24 = arith.constant 0 : index
    %33 = vector.load %arg9[%c0_23, %c0_24] : memref<1x768xf32, #tpu.memory_space<vmem>>, vector<1x768xf32>
    %34 = vector.broadcast %33 : vector<1x768xf32> to vector<8x768xf32>
    %35 = arith.addf %32, %34 : vector<8x768xf32>
    %36 = arith.negf %35 : vector<8x768xf32>
    %37 = math.exp %36 : vector<8x768xf32>
    %cst_25 = arith.constant 1.000000e+00 : f32
    %38 = vector.broadcast %cst_25 : f32 to vector<8x768xf32>
    %39 = arith.addf %38, %37 : vector<8x768xf32>
    %40 = arith.divf %38, %39 : vector<8x768xf32>
    %c0_26 = arith.constant 0 : index
    %c0_27 = arith.constant 0 : index
    %41 = vector.load %arg11[%c0_26, %c0_27] : memref<8x768xf32, #tpu.memory_space<vmem>>, vector<8x768xf32>
    tpu.vector_store %arg11[%c0_26, %c0_27], %40 {strides = array<i32>} : memref<8x768xf32, #tpu.memory_space<vmem>>, vector<8x768xf32>,
    %c0_28 = arith.constant 0 : index
    %c0_29 = arith.constant 0 : index
    %42 = vector.load %arg12[%c0_28, %c0_29] : memref<8x128xf32, #tpu.memory_space<vmem>>, vector<8x128xf32>
    tpu.vector_store %arg12[%c0_28, %c0_29], %14 {strides = array<i32>} : memref<8x128xf32, #tpu.memory_space<vmem>>, vector<8x128xf32>,
    %c0_30 = arith.constant 0 : index
    %c0_31 = arith.constant 0 : index
    %43 = vector.load %arg13[%c0_30, %c0_31] : memref<8x128xf32, #tpu.memory_space<vmem>>, vector<8x128xf32>
    tpu.vector_store %arg13[%c0_30, %c0_31], %15 {strides = array<i32>} : memref<8x128xf32, #tpu.memory_space<vmem>>, vector<8x128xf32>,
    return
  }
  func.func @transform_0(%arg0: i32) -> (i32, i32) {
    %c0_i32 = arith.constant 0 : i32
    %c0_i32_0 = arith.constant 0 : i32
    return %arg0, %c0_i32 : i32, i32
  }
  func.func @transform_1(%arg0: i32) -> (i32, i32) {
    %c0_i32 = arith.constant 0 : i32
    %c0_i32_0 = arith.constant 0 : i32
    %c0_i32_1 = arith.constant 0 : i32
    return %c0_i32, %c0_i32_0 : i32, i32
  }
  func.func @transform_2(%arg0: i32) -> (i32, i32) {
    %c0_i32 = arith.constant 0 : i32
    %c0_i32_0 = arith.constant 0 : i32
    %c0_i32_1 = arith.constant 0 : i32
    return %c0_i32, %c0_i32_0 : i32, i32
  }
  func.func @transform_3(%arg0: i32) -> (i32, i32) {
    %c0_i32 = arith.constant 0 : i32
    %c0_i32_0 = arith.constant 0 : i32
    %c0_i32_1 = arith.constant 0 : i32
    return %c0_i32, %c0_i32_0 : i32, i32
  }
  func.func @transform_4(%arg0: i32) -> (i32, i32) {
    %c0_i32 = arith.constant 0 : i32
    %c0_i32_0 = arith.constant 0 : i32
    %c0_i32_1 = arith.constant 0 : i32
    return %c0_i32, %c0_i32_0 : i32, i32
  }
  func.func @transform_5(%arg0: i32) -> (i32, i32) {
    %c0_i32 = arith.constant 0 : i32
    %c0_i32_0 = arith.constant 0 : i32
    %c0_i32_1 = arith.constant 0 : i32
    return %c0_i32, %c0_i32_0 : i32, i32
  }
  func.func @transform_6(%arg0: i32) -> (i32, i32) {
    %c0_i32 = arith.constant 0 : i32
    %c0_i32_0 = arith.constant 0 : i32
    %c0_i32_1 = arith.constant 0 : i32
    return %c0_i32, %c0_i32_0 : i32, i32
  }
  func.func @transform_7(%arg0: i32) -> (i32, i32) {
    %c0_i32 = arith.constant 0 : i32
    %c0_i32_0 = arith.constant 0 : i32
    %c0_i32_1 = arith.constant 0 : i32
    return %c0_i32, %c0_i32_0 : i32, i32
  }
  func.func @transform_8(%arg0: i32) -> (i32, i32) {
    %c0_i32 = arith.constant 0 : i32
    %c0_i32_0 = arith.constant 0 : i32
    %c0_i32_1 = arith.constant 0 : i32
    return %c0_i32, %c0_i32_0 : i32, i32
  }
  func.func @transform_9(%arg0: i32) -> (i32, i32) {
    %c0_i32 = arith.constant 0 : i32
    %c0_i32_0 = arith.constant 0 : i32
    return %arg0, %c0_i32 : i32, i32
  }
  func.func @transform_10(%arg0: i32) -> (i32, i32) {
    %c0_i32 = arith.constant 0 : i32
    %c0_i32_0 = arith.constant 0 : i32
    return %arg0, %c0_i32 : i32, i32
  }
  func.func @transform_11(%arg0: i32) -> (i32, i32) {
    %c0_i32 = arith.constant 0 : i32
    %c0_i32_0 = arith.constant 0 : i32
    return %arg0, %c0_i32 : i32, i32
  }
  func.func @transform_12(%arg0: i32) -> (i32, i32) {
    %c0_i32 = arith.constant 0 : i32
    %c0_i32_0 = arith.constant 0 : i32
    return %arg0, %c0_i32 : i32, i32
  }
}

</mosaic_0001>

<bundles_post_ra>
// kernel: tpu_custom_call.1
= control target key start
LH: loop header
LB: loop body
LE: loop exit
PB: predicated region body
PF: predicated region fallthrough
CT: control target
= control target key end

     0   :  { %18 = vsyncpa [#allocation3], 0  ;;  %s3250_s0 = inlined_call_operand.hbm [shape: bf16[8,768], index: 0, kind: input, shape index: {}]   ;;  %s3251_s1 = inlined_call_operand.hbm [shape: bf16[768,256], index: 1, kind: input, shape index: {}]   ;;  %s3252_s2 = inlined_call_operand.hbm [shape: f32[1,256], index: 2, kind: input, shape index: {}]   ;;  %s3253_s3 = inlined_call_operand.hbm [shape: bf16[256,256], index: 3, kind: input, shape index: {}]   ;;  %s3254_s4 = inlined_call_operand.hbm [shape: f32[1,256], index: 4, kind: input, shape index: {}]   ;;  %s3255_s5 = inlined_call_operand.hbm [shape: bf16[128,256], index: 5, kind: input, shape index: {}]   ;;  %s3256_s6 = inlined_call_operand.vmem [shape: f32[1,256], index: 6, kind: input, shape index: {}]   ;;  %s3257_s7 = inlined_call_operand.hbm [shape: bf16[256,768], index: 7, kind: input, shape index: {}]   ;;  %s3258_s8 = inlined_call_operand.vmem [shape: f32[1,768], index: 8, kind: input, shape index: {}]   ;;  %s3259_s9 = inlined_call_operand.vmem [shape: f32[8,128], index: 9, kind: input, shape index: {}]   ;;  %s3260_s10 = inlined_call_operand.hbm [shape: f32[8,768], index: 10, kind: output, shape index: {0}]   ;;  %s3261_s11 = inlined_call_operand.hbm [shape: f32[8,128], index: 11, kind: output, shape index: {1}]   ;;  %s3262_s12 = inlined_call_operand.hbm [shape: f32[8,128], index: 12, kind: output, shape index: {2}]  }
   0x1   :  { %19 = vsyncpa [#allocation6], 0 }
   0x2   :  { %20 = vsyncpa [#allocation9], 0 }
   0x3   :  { %21 = vsyncpa [#allocation12], 0 }
   0x4   :  { %22 = vsyncpa [#allocation4], 0 }
   0x5   :  { %23 = vsyncpa [#allocation16], 0  ;;  %s2995_s21 = smov [#allocation5]   ;;  %s2763_s25 = scalar_lea.hbm %s3251_s1, 12288 }
   0x6   :  { %s39_s22 = sshll.u32 %s2995_s21, 4  ;;  %p2764_p0 = scmp.ne.s32.totalorder %s3251_s1, %s2763_s25  ;;  %s40_s22 = int_to_ptr.vmem [resolvable:$true] %s39_s22 }
   0x7   :  { %p2767_p1 = scmp.lt.u32.totalorder %s2763_s25, %s3251_s1 }
   0x9   :  { %p2769_p2 = pnand %p2767_p1, %p2764_p0 }
   0xb   :  { %2772 = shalt.err (!%p2769_p2)
}
   0xc   :  { %s2773_s30 = scalar_lea.vmem %s40_s22, 12288  ;;  %p2778_p4 = scmp.lt.s32.totalorder %s40_s22, %s40_s22 }
   0xd   :  { %p2774_p3 = scmp.ne.s32.totalorder %s40_s22, %s2773_s30  ;;  %p2779_p5 = scmp.lt.s32.totalorder %s2773_s30, %s2773_s30 }
   0xf   :  { %p2780_p6 = por %p2779_p5, %p2778_p4 }
  0x11   :  { %p2781_p7 = pnand %p2780_p6, %p2774_p3 }
  0x13   :  { %2784 = shalt.err (!%p2781_p7)
}
  0x14   :  { %s2996_s13 = smov 128   ;;  %s2997_s14 = smov 8  }
  0x15   :  { %45 = dma.hbm_to_vmem [thread:$0]  %s3251_s1, 12288, %s40_s22, [#allocation6], %s2996_s13, %s2996_s13, %s2997_s14  }
  0x16   :  { %s2998_s17 = smov [#allocation8]   ;;  %s2999_s19 = smov [#allocation11]  }
  0x17   :  { %s61_s18 = sshll.u32 %s2998_s17, 4  ;;  %s83_s20 = sshll.u32 %s2999_s19, 4  ;;  %s62_s18 = int_to_ptr.vmem [resolvable:$true] %s61_s18  ;;  %s84_s20 = int_to_ptr.vmem [resolvable:$true] %s83_s20 }
  0x18   :  { %s2785_s24 = scalar_lea.hbm %s3253_s3, 4096 }
  0x19   :  { %p2786_p8 = scmp.ne.s32.totalorder %s3253_s3, %s2785_s24  ;;  %p2789_p9 = scmp.lt.u32.totalorder %s2785_s24, %s3253_s3 }
  0x1b   :  { %p2791_p10 = pnand %p2789_p9, %p2786_p8 }
  0x1d   :  { %2794 = shalt.err (!%p2791_p10)
}
  0x1e   :  { %s2795_s1 = scalar_lea.vmem %s62_s18, 4096  ;;  %p2800_p12 = scmp.lt.s32.totalorder %s62_s18, %s62_s18 }
  0x1f   :  { %p2796_p11 = scmp.ne.s32.totalorder %s62_s18, %s2795_s1  ;;  %p2801_p13 = scmp.lt.s32.totalorder %s2795_s1, %s2795_s1 }
  0x21   :  { %p2802_p0 = por %p2801_p13, %p2800_p12 }
  0x23   :  { %p2803_p1 = pnand %p2802_p0, %p2796_p11 }
  0x25   :  { %2806 = shalt.err (!%p2803_p1)
}
  0x26   :  { %67 = dma.hbm_to_vmem [thread:$0]  %s3253_s3, 4096, %s62_s18, [#allocation9], %s2996_s13, %s2996_s13, %s2997_s14  }
  0x27   :  { %s2807_s16 = scalar_lea.hbm %s3255_s5, 2048 }
  0x28   :  { %p2808_p2 = scmp.ne.s32.totalorder %s3255_s5, %s2807_s16  ;;  %p2811_p3 = scmp.lt.u32.totalorder %s2807_s16, %s3255_s5 }
  0x2a   :  { %p2813_p4 = pnand %p2811_p3, %p2808_p2 }
  0x2c   :  { %2816 = shalt.err (!%p2813_p4)
}
  0x2d   :  { %s2817_s24 = scalar_lea.vmem %s84_s20, 2048  ;;  %p2822_p6 = scmp.lt.s32.totalorder %s84_s20, %s84_s20 }
  0x2e   :  { %p2818_p5 = scmp.ne.s32.totalorder %s84_s20, %s2817_s24  ;;  %p2823_p7 = scmp.lt.s32.totalorder %s2817_s24, %s2817_s24 }
  0x30   :  { %p2824_p8 = por %p2823_p7, %p2822_p6 }
  0x32   :  { %p2825_p9 = pnand %p2824_p8, %p2818_p5 }
  0x34   :  { %2828 = shalt.err (!%p2825_p9)
}
  0x35   :  { %89 = dma.hbm_to_vmem [thread:$0]  %s3255_s5, 2048, %s84_s20, [#allocation12], %s2996_s13, %s2996_s13, %s2997_s14  }
  0x36   :  { %s3000_s25 = smov [#allocation2]   ;;  %s3001_s27 = smov [#allocation7]  }
  0x37   :  { %s30_s26 = sshll.u32 %s3000_s25, 4  ;;  %s52_s28 = sshll.u32 %s3001_s27, 4  ;;  %s31_s26 = int_to_ptr.vmem [resolvable:$true] %s30_s26  ;;  %s53_s28 = int_to_ptr.vmem [resolvable:$true] %s52_s28 }
  0x38   :  { %s2829_s29 = scalar_lea.hbm %s3250_s0, 384 }
  0x39   :  { %p2830_p10 = scmp.ne.s32.totalorder %s3250_s0, %s2829_s29  ;;  %p2833_p11 = scmp.lt.u32.totalorder %s2829_s29, %s3250_s0 }
  0x3b   :  { %p2835_p12 = pnand %p2833_p11, %p2830_p10 }
  0x3d   :  { %2838 = shalt.err (!%p2835_p12)
}
  0x3e   :  { %s2839_s5 = scalar_lea.vmem %s31_s26, 384  ;;  %p2844_p0 = scmp.lt.s32.totalorder %s31_s26, %s31_s26 }
  0x3f   :  { %p2840_p13 = scmp.ne.s32.totalorder %s31_s26, %s2839_s5  ;;  %p2845_p1 = scmp.lt.s32.totalorder %s2839_s5, %s2839_s5 }
  0x41   :  { %p2846_p2 = por %p2845_p1, %p2844_p0 }
  0x43   :  { %p2847_p3 = pnand %p2846_p2, %p2840_p13 }
  0x45   :  { %2850 = shalt.err (!%p2847_p3)
}
  0x46   :  { %33 = dma.hbm_to_vmem [thread:$0]  %s3250_s0, 384, %s31_s26, [#allocation3]  }
  0x47   :  { %s2851_s21 = scalar_lea.hbm %s3252_s2, 32 }
  0x48   :  { %p2852_p4 = scmp.ne.s32.totalorder %s3252_s2, %s2851_s21  ;;  %p2855_p5 = scmp.lt.u32.totalorder %s2851_s21, %s3252_s2 }
  0x4a   :  { %p2857_p6 = pnand %p2855_p5, %p2852_p4 }
  0x4c   :  { %2860 = shalt.err (!%p2857_p6)
}
  0x4d   :  { %s2861_s25 = scalar_lea.vmem %s53_s28, 32  ;;  %p2866_p8 = scmp.lt.s32.totalorder %s53_s28, %s53_s28 }
  0x4e   :  { %p2862_p7 = scmp.ne.s32.totalorder %s53_s28, %s2861_s25  ;;  %p2867_p9 = scmp.lt.s32.totalorder %s2861_s25, %s2861_s25 }
  0x50   :  { %p2868_p10 = por %p2867_p9, %p2866_p8 }
  0x52   :  { %p2869_p11 = pnand %p2868_p10, %p2862_p7 }
  0x54   :  { %2872 = shalt.err (!%p2869_p11)
}
  0x55   :  { %55 = dma.hbm_to_vmem [thread:$0]  %s3252_s2, 32, %s53_s28, [#allocation6]  }
  0x56   :  { %s3002_s27 = smov [#allocation10]   ;;  %s3003_s22 = smov [#allocation13]  }
  0x57   :  { %s74_s1 = sshll.u32 %s3002_s27, 4  ;;  %s97_s29 = sshll.u32 %s3003_s22, 4  ;;  %s75_s1 = int_to_ptr.vmem [resolvable:$true] %s74_s1  ;;  %s98_s29 = int_to_ptr.vmem [resolvable:$true] %s97_s29 }
  0x58   :  { %s2873_s16 = scalar_lea.hbm %s3254_s4, 32 }
  0x59   :  { %p2874_p12 = scmp.ne.s32.totalorder %s3254_s4, %s2873_s16  ;;  %p2877_p13 = scmp.lt.u32.totalorder %s2873_s16, %s3254_s4 }
  0x5b   :  { %p2879_p0 = pnand %p2877_p13, %p2874_p12 }
  0x5d   :  { %2882 = shalt.err (!%p2879_p0)
}
  0x5e   :  { %s2883_s2 = scalar_lea.vmem %s75_s1, 32  ;;  %p2888_p2 = scmp.lt.s32.totalorder %s75_s1, %s75_s1 }
  0x5f   :  { %p2884_p1 = scmp.ne.s32.totalorder %s75_s1, %s2883_s2  ;;  %p2889_p3 = scmp.lt.s32.totalorder %s2883_s2, %s2883_s2 }
  0x61   :  { %p2890_p4 = por %p2889_p3, %p2888_p2 }
  0x63   :  { %p2891_p5 = pnand %p2890_p4, %p2884_p1 }
  0x65   :  { %2894 = shalt.err (!%p2891_p5)
}
  0x66   :  { %77 = dma.hbm_to_vmem [thread:$0]  %s3254_s4, 32, %s75_s1, [#allocation9]  }
  0x67   :  { %s2895_s23 = scalar_lea.hbm %s3257_s7, 12288 }
  0x68   :  { %p2896_p6 = scmp.ne.s32.totalorder %s3257_s7, %s2895_s23  ;;  %p2899_p7 = scmp.lt.u32.totalorder %s2895_s23, %s3257_s7 }
  0x6a   :  { %p2901_p8 = pnand %p2899_p7, %p2896_p6 }
  0x6c   :  { %2904 = shalt.err (!%p2901_p8)
}
  0x6d   :  { %s2905_s0 = scalar_lea.vmem %s98_s29, 12288  ;;  %p2910_p10 = scmp.lt.s32.totalorder %s98_s29, %s98_s29 }
  0x6e   :  { %p2906_p9 = scmp.ne.s32.totalorder %s98_s29, %s2905_s0  ;;  %p2911_p11 = scmp.lt.s32.totalorder %s2905_s0, %s2905_s0 }
  0x70   :  { %p2912_p12 = por %p2911_p11, %p2910_p10 }
  0x72   :  { %p2913_p13 = pnand %p2912_p12, %p2906_p9 }
  0x74   :  { %2916 = shalt.err (!%p2913_p13)
}
  0x75   :  { %s3004_s4 = smov 384   ;;  %s3005_s26 = smov 24  }
  0x76   :  { %103 = dma.hbm_to_vmem [thread:$0]  %s3257_s7, 12288, %s98_s29, [#allocation12], %s3004_s4, %s3004_s4, %s3005_s26  }
  0x77   :  { %2983 = dma.done.wait [#allocation3], 384  }
  0x78   :  { %2984 = vsyncadd [#allocation3], 4294966912 }
  0x79   :  { %2985 = dma.done.wait [#allocation6], 12320  }
  0x7a   :  { %2986 = vsyncadd [#allocation6], 4294954976 }
  0x7b   :  { %2987 = dma.done.wait [#allocation9], 4128  }
  0x7c   :  { %2988 = vsyncadd [#allocation9], 4294963168 }
  0x7d   :  { %2989 = dma.done.wait [#allocation12], 14336  }
  0x7e   :  { %2990 = vsyncadd [#allocation12], 4294952960  ;;  %v2371_v0 = vld [vmem:[#allocation5 + $0x4] ss:$8 sps:$4 sm:$0xff]   ;;  %v2373_v1 = vld [vmem:[#allocation5] ss:$8 sps:$4 sm:$0xff]  }
  0x7f   :  { %742 = vmatprep.subr.bf16.mxu0 %v2371_v0  ;;  %v2374_v2 = vld [vmem:[#allocation5 + $0x14] ss:$8 sps:$4 sm:$0xff]   ;;  %v2376_v3 = vld [vmem:[#allocation5 + $0x10] ss:$8 sps:$4 sm:$0xff]   ;;  %v2377_v4 = vld [vmem:[#allocation5 + $0x24] ss:$8 sps:$4 sm:$0xff]  }
  0x80   :  { %743 = vmatpush1.bf16.msra.mxu0 %v2373_v1  ;;  %v2379_v5 = vld [vmem:[#allocation5 + $0x20] ss:$8 sps:$4 sm:$0xff]   ;;  %v2380_v6 = vld [vmem:[#allocation5 + $0x34] ss:$8 sps:$4 sm:$0xff]   ;;  %v2382_v7 = vld [vmem:[#allocation5 + $0x30] ss:$8 sps:$4 sm:$0xff]  }
  0x81   :  { %744 = vmatprep.subr.bf16.mxu0 %v2374_v2  ;;  %v2383_v8 = vld [vmem:[#allocation5 + $0x44] ss:$8 sps:$4 sm:$0xff]   ;;  %v2385_v9 = vld [vmem:[#allocation5 + $0x40] ss:$8 sps:$4 sm:$0xff]   ;;  %v2386_v10 = vld [vmem:[#allocation5 + $0x54] ss:$8 sps:$4 sm:$0xff]  }
  0x82   :  { %v2388_v11 = vld [vmem:[#allocation5 + $0x50] ss:$8 sps:$4 sm:$0xff]   ;;  %v2389_v12 = vld [vmem:[#allocation5 + $0x64] ss:$8 sps:$4 sm:$0xff]   ;;  %v2391_v15 = vld [vmem:[#allocation5 + $0x60] ss:$8 sps:$4 sm:$0xff]  }
  0x83   :  { %v130_v13 = vld [vmem:[#allocation2] sm:$0xff]  ;;  %v2392_v16 = vld [vmem:[#allocation5 + $0x74] ss:$8 sps:$4 sm:$0xff]   ;;  %v2394_v17 = vld [vmem:[#allocation5 + $0x70] ss:$8 sps:$4 sm:$0xff]  }
  0x84   :  { %745 = vmatpush1.bf16.msra.mxu0 %v2376_v3  ;;  %v2095_v14 = vcombine.high %v130_v13, %v130_v13  ;;  %v2395_v18 = vld [vmem:[#allocation5 + $0x84] ss:$8 sps:$4 sm:$0xff]   ;;  %v2397_v19 = vld [vmem:[#allocation5 + $0x80] ss:$8 sps:$4 sm:$0xff]   ;;  %v2398_v20 = vld [vmem:[#allocation5 + $0x94] ss:$8 sps:$4 sm:$0xff]   ;;  %v2094_v36 = vcombine.low %v130_v13, %v130_v13 }
  0x85   :  { %746 = vmatprep.subr.bf16.mxu0 %v2377_v4  ;;  %v2400_v21 = vld [vmem:[#allocation5 + $0x90] ss:$8 sps:$4 sm:$0xff]   ;;  %v2401_v22 = vld [vmem:[#allocation5 + $0xa4] ss:$8 sps:$4 sm:$0xff]   ;;  %v2403_v23 = vld [vmem:[#allocation5 + $0xa0] ss:$8 sps:$4 sm:$0xff]  }
  0x86   :  { %774 = vmatprep.mubr.bf16.mxu0 %v2095_v14  ;;  %v2404_v24 = vld [vmem:[#allocation5 + $0xb4] ss:$8 sps:$4 sm:$0xff]   ;;  %v2406_v25 = vld [vmem:[#allocation5 + $0xb0] ss:$8 sps:$4 sm:$0xff]   ;;  %v2407_v26 = vld [vmem:[#allocation5 + $0xc4] ss:$8 sps:$4 sm:$0xff]  }
  0x87   :  { %v2409_v27 = vld [vmem:[#allocation5 + $0xc0] ss:$8 sps:$4 sm:$0xff]   ;;  %v2410_v28 = vld [vmem:[#allocation5 + $0xd4] ss:$8 sps:$4 sm:$0xff]   ;;  %v2412_v29 = vld [vmem:[#allocation5 + $0xd0] ss:$8 sps:$4 sm:$0xff]  }
  0x88   :  { %747 = vmatpush1.bf16.msra.mxu0 %v2379_v5  ;;  %v2413_v30 = vld [vmem:[#allocation5 + $0xe4] ss:$8 sps:$4 sm:$0xff]   ;;  %v2415_v31 = vld [vmem:[#allocation5 + $0xe0] ss:$8 sps:$4 sm:$0xff]   ;;  %v2416_v32 = vld [vmem:[#allocation5 + $0xf4] ss:$8 sps:$4 sm:$0xff]  }
  0x89   :  { %748 = vmatprep.subr.bf16.mxu0 %v2380_v6  ;;  %v2418_v33 = vld [vmem:[#allocation5 + $0xf0] ss:$8 sps:$4 sm:$0xff]   ;;  %v2423_v34 = vld [vmem:[#allocation5 + $0x104] ss:$8 sps:$4 sm:$0xff]   ;;  %v2421_v37 = vld [vmem:[#allocation5 + $0x100] ss:$8 sps:$4 sm:$0xff]  }
  0x8a   :  { %v3168_v35 = vld [vmem:[#allocation2 + $0x8] sm:$0xff]  ;;  %v2523_v41 = vld [vmem:[#allocation8] ss:$8 sps:$4 sm:$0xff]  }
  0x8b   :  { %v2097_v38 = vcombine.high %v3168_v35, %v3168_v35  ;;  %v2426_v39 = vld [vmem:[#allocation5 + $0x114] ss:$8 sps:$4 sm:$0xff]   ;;  %v2521_v40 = vld [vmem:[#allocation8 + $0x4] ss:$8 sps:$4 sm:$0xff]   ;;  %v2529_v49 = vld [vmem:[#allocation8 + $0x20] ss:$8 sps:$4 sm:$0xff]  }
  0x8c   :  { %749 = vmatpush1.bf16.msra.mxu0 %v2382_v7  ;;  %v2424_v42 = vld [vmem:[#allocation5 + $0x110] ss:$8 sps:$4 sm:$0xff]   ;;  %v2429_v44 = vld [vmem:[#allocation5 + $0x124] ss:$8 sps:$4 sm:$0xff]   ;;  %1073 = vmatprep.subr.bf16.mxu1 %v2521_v40  ;;  %v2427_v47 = vld [vmem:[#allocation5 + $0x120] ss:$8 sps:$4 sm:$0xff]  }
  0x8d   :  { %750 = vmatprep.subr.bf16.mxu0 %v2383_v8  ;;  %v2524_v43 = vld [vmem:[#allocation8 + $0x14] ss:$8 sps:$4 sm:$0xff]   ;;  %1074 = vmatpush1.bf16.msra.mxu1 %v2523_v41  ;;  %v2526_v45 = vld [vmem:[#allocation8 + $0x10] ss:$8 sps:$4 sm:$0xff]   ;;  %v2527_v46 = vld [vmem:[#allocation8 + $0x24] ss:$8 sps:$4 sm:$0xff]  }
  0x8e   :  { %1075 = vmatprep.subr.bf16.mxu1 %v2524_v43  ;;  %v2432_v48 = vld [vmem:[#allocation5 + $0x134] ss:$8 sps:$4 sm:$0xff]   ;;  %v2430_v51 = vld [vmem:[#allocation5 + $0x130] ss:$8 sps:$4 sm:$0xff]   ;;  %v2435_v52 = vld [vmem:[#allocation5 + $0x144] ss:$8 sps:$4 sm:$0xff]  }
  0x8f   :  { %v2530_v50 = vld [vmem:[#allocation8 + $0x34] ss:$8 sps:$4 sm:$0xff]   ;;  %v2532_v53 = vld [vmem:[#allocation8 + $0x30] ss:$8 sps:$4 sm:$0xff]   ;;  %v2533_v54 = vld [vmem:[#allocation8 + $0x44] ss:$8 sps:$4 sm:$0xff]  }
  0x90   :  { %751 = vmatpush1.bf16.msra.mxu0 %v2385_v9  ;;  %v2433_v55 = vld [vmem:[#allocation5 + $0x140] ss:$8 sps:$4 sm:$0xff]   ;;  %v2438_v56 = vld [vmem:[#allocation5 + $0x154] ss:$8 sps:$4 sm:$0xff]   ;;  %v2436_v59 = vld [vmem:[#allocation5 + $0x150] ss:$8 sps:$4 sm:$0xff]  }
  0x91   :  { %752 = vmatprep.subr.bf16.mxu0 %v2386_v10  ;;  %1076 = vmatpush1.bf16.msra.mxu1 %v2526_v45  ;;  %v2535_v57 = vld [vmem:[#allocation8 + $0x40] ss:$8 sps:$4 sm:$0xff]   ;;  %v2536_v58 = vld [vmem:[#allocation8 + $0x54] ss:$8 sps:$4 sm:$0xff]   ;;  %v2538_v61 = vld [vmem:[#allocation8 + $0x50] ss:$8 sps:$4 sm:$0xff]  }
  0x92   :  { %1077 = vmatprep.subr.bf16.mxu1 %v2527_v46  ;;  %v2441_v60 = vld [vmem:[#allocation5 + $0x164] ss:$8 sps:$4 sm:$0xff]   ;;  %v2439_v63 = vld [vmem:[#allocation5 + $0x160] ss:$8 sps:$4 sm:$0xff]   ;;  %v2444_v0 = vld [vmem:[#allocation5 + $0x174] ss:$8 sps:$4 sm:$0xff]  }
  0x93   :  { %v2539_v62 = vld [vmem:[#allocation8 + $0x64] ss:$8 sps:$4 sm:$0xff]   ;;  %v2541_v1 = vld [vmem:[#allocation8 + $0x60] ss:$8 sps:$4 sm:$0xff]   ;;  %v2542_v2 = vld [vmem:[#allocation8 + $0x74] ss:$8 sps:$4 sm:$0xff]  }
  0x94   :  { %753 = vmatpush1.bf16.msra.mxu0 %v2388_v11  ;;  %v2442_v3 = vld [vmem:[#allocation5 + $0x170] ss:$8 sps:$4 sm:$0xff]   ;;  %v2447_v4 = vld [vmem:[#allocation5 + $0x184] ss:$8 sps:$4 sm:$0xff]   ;;  %v2445_v7 = vld [vmem:[#allocation5 + $0x180] ss:$8 sps:$4 sm:$0xff]  }
  0x95   :  { %754 = vmatprep.subr.bf16.mxu0 %v2389_v12  ;;  %1078 = vmatpush1.bf16.msra.mxu1 %v2529_v49  ;;  %v2544_v5 = vld [vmem:[#allocation8 + $0x70] ss:$8 sps:$4 sm:$0xff]   ;;  %v2545_v6 = vld [vmem:[#allocation8 + $0x84] ss:$8 sps:$4 sm:$0xff]   ;;  %v2547_v9 = vld [vmem:[#allocation8 + $0x80] ss:$8 sps:$4 sm:$0xff]  }
  0x96   :  { %1079 = vmatprep.subr.bf16.mxu1 %v2530_v50  ;;  %v2450_v8 = vld [vmem:[#allocation5 + $0x194] ss:$8 sps:$4 sm:$0xff]   ;;  %v2448_v11 = vld [vmem:[#allocation5 + $0x190] ss:$8 sps:$4 sm:$0xff]   ;;  %v2453_v12 = vld [vmem:[#allocation5 + $0x1a4] ss:$8 sps:$4 sm:$0xff]  }
  0x97   :  { %v2548_v10 = vld [vmem:[#allocation8 + $0x94] ss:$8 sps:$4 sm:$0xff]   ;;  %v2550_v13 = vld [vmem:[#allocation8 + $0x90] ss:$8 sps:$4 sm:$0xff]   ;;  %v2551_v14 = vld [vmem:[#allocation8 + $0xa4] ss:$8 sps:$4 sm:$0xff]  }
  0x98   :  { %755 = vmatpush1.bf16.msra.mxu0 %v2391_v15  ;;  %v2451_v15 = vld [vmem:[#allocation5 + $0x1a0] ss:$8 sps:$4 sm:$0xff]   ;;  %v2474_v40 = vld [vmem:[#allocation5 + $0x210] ss:$8 sps:$4 sm:$0xff]   ;;  %v2479_v41 = vld [vmem:[#allocation5 + $0x224] ss:$8 sps:$4 sm:$0xff]  }
  0x99   :  { %756 = vmatprep.subr.bf16.mxu0 %v2392_v16  ;;  %1080 = vmatpush1.bf16.msra.mxu1 %v2532_v53  ;;  %v2456_v16 = vld [vmem:[#allocation5 + $0x1b4] ss:$8 sps:$4 sm:$0xff]   ;;  %v2483_v45 = vld [vmem:[#allocation5 + $0x240] ss:$8 sps:$4 sm:$0xff]  }
  0x9a   :  { %1081 = vmatprep.subr.bf16.mxu1 %v2533_v54  ;;  %v2482_v43 = vld [vmem:[#allocation5 + $0x234] ss:$8 sps:$4 sm:$0xff]   ;;  %v2489_v49 = vld [vmem:[#allocation5 + $0x260] ss:$8 sps:$4 sm:$0xff]  }
  0x9b   :  { %v2488_v46 = vld [vmem:[#allocation5 + $0x254] ss:$8 sps:$4 sm:$0xff]   ;;  %v2495_v53 = vld [vmem:[#allocation5 + $0x280] ss:$8 sps:$4 sm:$0xff]  }
  0x9c   :  { %757 = vmatpush1.bf16.msra.mxu0 %v2394_v17  ;;  %v2553_v17 = vld [vmem:[#allocation8 + $0xa0] ss:$8 sps:$4 sm:$0xff]   ;;  %v2494_v50 = vld [vmem:[#allocation5 + $0x274] ss:$8 sps:$4 sm:$0xff]  }
  0x9d   :  { %758 = vmatprep.subr.bf16.mxu0 %v2395_v18  ;;  %1082 = vmatpush1.bf16.msra.mxu1 %v2535_v57  ;;  %v2554_v18 = vld [vmem:[#allocation8 + $0xb4] ss:$8 sps:$4 sm:$0xff]  }
  0x9e   :  { %1083 = vmatprep.subr.bf16.mxu1 %v2536_v58  ;;  %v2500_v54 = vld [vmem:[#allocation5 + $0x294] ss:$8 sps:$4 sm:$0xff]   ;;  %v2501_v57 = vld [vmem:[#allocation5 + $0x2a0] ss:$8 sps:$4 sm:$0xff]  }
  0x9f   :  { %v2506_v58 = vld [vmem:[#allocation5 + $0x2b4] ss:$8 sps:$4 sm:$0xff]  }
  0xa0   :  { %759 = vmatpush1.bf16.msra.mxu0 %v2397_v19  ;;  %v2454_v19 = vld [vmem:[#allocation5 + $0x1b0] ss:$8 sps:$4 sm:$0xff]  }
  0xa1   :  { %760 = vmatprep.subr.bf16.mxu0 %v2398_v20  ;;  %1084 = vmatpush1.bf16.msra.mxu1 %v2538_v61  ;;  %v2459_v20 = vld [vmem:[#allocation5 + $0x1c4] ss:$8 sps:$4 sm:$0xff]   ;;  %v2507_v61 = vld [vmem:[#allocation5 + $0x2c0] ss:$8 sps:$4 sm:$0xff]  }
  0xa2   :  { %1085 = vmatprep.subr.bf16.mxu1 %v2539_v62  ;;  %v2512_v62 = vld [vmem:[#allocation5 + $0x2d4] ss:$8 sps:$4 sm:$0xff]  }
  0xa4   :  { %761 = vmatpush1.bf16.msra.mxu0 %v2400_v21  ;;  %v2556_v21 = vld [vmem:[#allocation8 + $0xb0] ss:$8 sps:$4 sm:$0xff]  }
  0xa5   :  { %762 = vmatprep.subr.bf16.mxu0 %v2401_v22  ;;  %1086 = vmatpush1.bf16.msra.mxu1 %v2541_v1  ;;  %v2557_v22 = vld [vmem:[#allocation8 + $0xc4] ss:$8 sps:$4 sm:$0xff]  }
  0xa6   :  { %1087 = vmatprep.subr.bf16.mxu1 %v2542_v2  ;;  %v2513_v1 = vld [vmem:[#allocation5 + $0x2e0] ss:$8 sps:$4 sm:$0xff]   ;;  %v2518_v2 = vld [vmem:[#allocation5 + $0x2f4] ss:$8 sps:$4 sm:$0xff]  }
  0xa8   :  { %763 = vmatpush1.bf16.msra.mxu0 %v2403_v23  ;;  %v2457_v23 = vld [vmem:[#allocation5 + $0x1c0] ss:$8 sps:$4 sm:$0xff]  }
  0xa9   :  { %764 = vmatprep.subr.bf16.mxu0 %v2404_v24  ;;  %1088 = vmatpush1.bf16.msra.mxu1 %v2544_v5  ;;  %v2462_v24 = vld [vmem:[#allocation5 + $0x1d4] ss:$8 sps:$4 sm:$0xff]   ;;  %v2563_v5 = vld [vmem:[#allocation8 + $0xe4] ss:$8 sps:$4 sm:$0xff]  }
  0xaa   :  { %1089 = vmatprep.subr.bf16.mxu1 %v2545_v6  ;;  %v2565_v6 = vld [vmem:[#allocation8 + $0xe0] ss:$8 sps:$4 sm:$0xff]  }
  0xac   :  { %765 = vmatpush1.bf16.msra.mxu0 %v2406_v25  ;;  %v2559_v25 = vld [vmem:[#allocation8 + $0xc0] ss:$8 sps:$4 sm:$0xff]  }
  0xad   :  { %766 = vmatprep.subr.bf16.mxu0 %v2407_v26  ;;  %1090 = vmatpush1.bf16.msra.mxu1 %v2547_v9  ;;  %v2560_v26 = vld [vmem:[#allocation8 + $0xd4] ss:$8 sps:$4 sm:$0xff]   ;;  %v2571_v9 = vld [vmem:[#allocation11 + $0x4] ss:$8 sps:$4 sm:$0xff]  }
  0xae   :  { %1091 = vmatprep.subr.bf16.mxu1 %v2548_v10  ;;  %v231_v10 = vlaneseq }
  0xb0   :  { %767 = vmatpush1.bf16.msra.mxu0 %v2409_v27  ;;  %v2460_v27 = vld [vmem:[#allocation5 + $0x1d0] ss:$8 sps:$4 sm:$0xff]  }
  0xb1   :  { %768 = vmatprep.subr.bf16.mxu0 %v2410_v28  ;;  %1092 = vmatpush1.bf16.msra.mxu1 %v2550_v13  ;;  %v2465_v28 = vld [vmem:[#allocation5 + $0x1e4] ss:$8 sps:$4 sm:$0xff]   ;;  %v229_v13 = vld [vmem:[#allocation7] sm:$0x3] }
  0xb2   :  { %1093 = vmatprep.subr.bf16.mxu1 %v2551_v14 }
  0xb4   :  { %769 = vmatpush1.bf16.msra.mxu0 %v2412_v29  ;;  %v2562_v29 = vld [vmem:[#allocation8 + $0xd0] ss:$8 sps:$4 sm:$0xff]  }
  0xb5   :  { %770 = vmatprep.subr.bf16.mxu0 %v2413_v30  ;;  %1094 = vmatpush1.bf16.msra.mxu1 %v2553_v17  ;;  %v2463_v30 = vld [vmem:[#allocation5 + $0x1e0] ss:$8 sps:$4 sm:$0xff]  }
  0xb6   :  { %1095 = vmatprep.subr.bf16.mxu1 %v2554_v18 }
  0xb8   :  { %771 = vmatpush1.bf16.msra.mxu0 %v2415_v31  ;;  %v2468_v31 = vld [vmem:[#allocation5 + $0x1f4] ss:$8 sps:$4 sm:$0xff]  }
  0xb9   :  { %772 = vmatprep.subr.bf16.mxu0 %v2416_v32  ;;  %1096 = vmatpush1.bf16.msra.mxu1 %v2556_v21  ;;  %v2466_v32 = vld [vmem:[#allocation5 + $0x1f0] ss:$8 sps:$4 sm:$0xff]  }
  0xba   :  { %1097 = vmatprep.subr.bf16.mxu1 %v2557_v22 }
  0xbc   :  { %773 = vmatpush1.bf16.msra.mxu0 %v2418_v33  ;;  %v2473_v33 = vld [vmem:[#allocation5 + $0x204] ss:$8 sps:$4 sm:$0xff]  }
  0xbd   :  { %783 = vmatprep.subr.bf16.mxu0 %v2423_v34  ;;  %1098 = vmatpush1.bf16.msra.mxu1 %v2559_v25  ;;  %v3172_v34 = vld [vmem:[#allocation2 + $0x10] sm:$0xff] }
  0xbe   :  { %1099 = vmatprep.subr.bf16.mxu1 %v2560_v26  ;;  %v2569_v26 = vld [vmem:[#allocation11] ss:$8 sps:$4 sm:$0xff]  }
  0xbf   :  { %775 = vmatmul.mubr.bf16.vlgmr.msra.gmra.mrb[0].mxu0 %v2094_v36  ;;  %v2096_v36 = vcombine.low %v3168_v35, %v3168_v35  ;;  %v2485_v35 = vld [vmem:[#allocation5 + $0x244] ss:$8 sps:$4 sm:$0xff]  }
  0xc0   :  { %784 = vmatpush1.bf16.msra.mxu0 %v2421_v37  ;;  %815 = vmatprep.mubr.bf16.mxu0 %v2097_v38  ;;  %v2471_v37 = vld [vmem:[#allocation5 + $0x200] ss:$8 sps:$4 sm:$0xff]   ;;  %v2099_v38 = vcombine.high %v3172_v34, %v3172_v34 }
  0xc1   :  { %785 = vmatprep.subr.bf16.mxu0 %v2426_v39  ;;  %1100 = vmatpush1.bf16.msra.mxu1 %v2562_v29  ;;  %v2476_v39 = vld [vmem:[#allocation5 + $0x214] ss:$8 sps:$4 sm:$0xff]  }
  0xc2   :  { %1101 = vmatprep.subr.bf16.mxu1 %v2563_v5  ;;  %v2572_v29 = vld [vmem:[#allocation11 + $0x10] ss:$8 sps:$4 sm:$0xff]   ;;  %v2670_v5 = vld [vmem:[#allocation13 + $0x254] ss:$24 sps:$4 sm:$0xff]  }
  0xc4   :  { %786 = vmatpush1.bf16.msra.mxu0 %v2424_v42  ;;  %v2477_v42 = vld [vmem:[#allocation5 + $0x220] ss:$8 sps:$4 sm:$0xff]  }
  0xc5   :  { %787 = vmatprep.subr.bf16.mxu0 %v2429_v44  ;;  %v2480_v44 = vld [vmem:[#allocation5 + $0x230] ss:$8 sps:$4 sm:$0xff]   ;;  %1102 = vmatpush1.bf16.msra.mxu1 %v2565_v6  ;;  %v2674_v6 = vld [vmem:[#allocation13 + $0x280] ss:$24 sps:$4 sm:$0xff]  }
  0xc8   :  { %788 = vmatpush1.bf16.msra.mxu0 %v2427_v47  ;;  %v2486_v47 = vld [vmem:[#allocation5 + $0x250] ss:$8 sps:$4 sm:$0xff]  }
  0xc9   :  { %789 = vmatprep.subr.bf16.mxu0 %v2432_v48  ;;  %v2491_v48 = vld [vmem:[#allocation5 + $0x264] ss:$8 sps:$4 sm:$0xff]  }
  0xcc   :  { %790 = vmatpush1.bf16.msra.mxu0 %v2430_v51  ;;  %v2492_v51 = vld [vmem:[#allocation5 + $0x270] ss:$8 sps:$4 sm:$0xff]  }
  0xcd   :  { %791 = vmatprep.subr.bf16.mxu0 %v2435_v52  ;;  %v2497_v52 = vld [vmem:[#allocation5 + $0x284] ss:$8 sps:$4 sm:$0xff]  }
  0xd0   :  { %792 = vmatpush1.bf16.msra.mxu0 %v2433_v55  ;;  %v2498_v55 = vld [vmem:[#allocation5 + $0x290] ss:$8 sps:$4 sm:$0xff]  }
  0xd1   :  { %793 = vmatprep.subr.bf16.mxu0 %v2438_v56  ;;  %v2503_v56 = vld [vmem:[#allocation5 + $0x2a4] ss:$8 sps:$4 sm:$0xff]  }
  0xd4   :  { %794 = vmatpush1.bf16.msra.mxu0 %v2436_v59  ;;  %v2504_v59 = vld [vmem:[#allocation5 + $0x2b0] ss:$8 sps:$4 sm:$0xff]  }
  0xd5   :  { %795 = vmatprep.subr.bf16.mxu0 %v2441_v60  ;;  %v2509_v60 = vld [vmem:[#allocation5 + $0x2c4] ss:$8 sps:$4 sm:$0xff]  }
  0xd8   :  { %796 = vmatpush1.bf16.msra.mxu0 %v2439_v63  ;;  %v2510_v63 = vld [vmem:[#allocation5 + $0x2d0] ss:$8 sps:$4 sm:$0xff]  }
  0xd9   :  { %797 = vmatprep.subr.bf16.mxu0 %v2444_v0  ;;  %v2515_v0 = vld [vmem:[#allocation5 + $0x2e4] ss:$8 sps:$4 sm:$0xff]  }
  0xdc   :  { %798 = vmatpush1.bf16.msra.mxu0 %v2442_v3  ;;  %v2516_v3 = vld [vmem:[#allocation5 + $0x2f0] ss:$8 sps:$4 sm:$0xff]  }
  0xdd   :  { %799 = vmatprep.subr.bf16.mxu0 %v2447_v4  ;;  %v2098_v4 = vcombine.low %v3172_v34, %v3172_v34  ;;  %v2583_v34 = vld [vmem:[#allocation11 + $0x44] ss:$8 sps:$4 sm:$0xff]  }
  0xe0   :  { %800 = vmatpush1.bf16.msra.mxu0 %v2445_v7  ;;  %v2566_v7 = vld [vmem:[#allocation8 + $0xf4] ss:$8 sps:$4 sm:$0xff]  }
  0xe1   :  { %801 = vmatprep.subr.bf16.mxu0 %v2450_v8  ;;  %v2568_v8 = vld [vmem:[#allocation8 + $0xf0] ss:$8 sps:$4 sm:$0xff]   ;;  %1103 = vmatprep.subr.bf16.mxu1 %v2566_v7  ;;  %v2676_v7 = vld [vmem:[#allocation13 + $0x284] ss:$24 sps:$4 sm:$0xff]  }
  0xe2   :  { %1104 = vmatpush1.bf16.msra.mxu1 %v2568_v8  ;;  %v901_v8 = vld [vmem:[#allocation10] sm:$0x3] }
  0xe3   :  { %1229 = vmatprep.subr.bf16.mxu1 %v2571_v9 }
  0xe4   :  { %802 = vmatpush1.bf16.msra.mxu0 %v2448_v11  ;;  %v3180_v11 = vshrl.u32 %v231_v10, 7 }
  0xe5   :  { %803 = vmatprep.subr.bf16.mxu0 %v2453_v12 }
  0xe6   :  { %v3183_v12 = vsub.s32 0, %v3180_v11  ;;  %v3186_v14 = vsub.s32 1, %v3180_v11 }
  0xe8   :  { %804 = vmatpush1.bf16.msra.mxu0 %v2451_v15  ;;  %v234_v15 = vrot.slane %v229_v13, %v3183_v12  ;;  %v906_v9 = vrot.slane %v901_v8, %v3183_v12  ;;  %v910_v10 = vrot.slane %v901_v8, %v3186_v14 }
  0xe9   :  { %805 = vmatprep.subr.bf16.mxu0 %v2456_v16  ;;  %v238_v16 = vrot.slane %v229_v13, %v3186_v14 }
  0xec   :  { %806 = vmatpush1.bf16.msra.mxu0 %v2454_v19 }
  0xed   :  { %807 = vmatprep.subr.bf16.mxu0 %v2459_v20 }
  0xf0   :  { %808 = vmatpush1.bf16.msra.mxu0 %v2457_v23 }
  0xf1   :  { %809 = vmatprep.subr.bf16.mxu0 %v2462_v24 }
  0xf4   :  { %810 = vmatpush1.bf16.msra.mxu0 %v2460_v27 }
  0xf5   :  { %811 = vmatprep.subr.bf16.mxu0 %v2465_v28  ;;  %v2574_v28 = vld [vmem:[#allocation11 + $0x14] ss:$8 sps:$4 sm:$0xff]  }
  0xf8   :  { %812 = vmatpush1.bf16.msra.mxu0 %v2463_v30  ;;  %v2577_v30 = vld [vmem:[#allocation11 + $0x24] ss:$8 sps:$4 sm:$0xff]  }
  0xf9   :  { %813 = vmatprep.subr.bf16.mxu0 %v2468_v31  ;;  %v2575_v31 = vld [vmem:[#allocation11 + $0x20] ss:$8 sps:$4 sm:$0xff]  }
  0xfc   :  { %814 = vmatpush1.bf16.msra.mxu0 %v2466_v32  ;;  %v2580_v32 = vld [vmem:[#allocation11 + $0x34] ss:$8 sps:$4 sm:$0xff]  }
  0xfd   :  { %824 = vmatprep.subr.bf16.mxu0 %v2473_v33  ;;  %v2578_v33 = vld [vmem:[#allocation11 + $0x30] ss:$8 sps:$4 sm:$0xff]  }
  0xff   :  { %816 = vmatmul.mubr.bf16.vlgmr.msra.gmra.mrb[0].mxu0 %v2096_v36  ;;  %v2581_v36 = vld [vmem:[#allocation11 + $0x40] ss:$8 sps:$4 sm:$0xff]  }
 0x100   :  { %825 = vmatpush1.bf16.msra.mxu0 %v2471_v37  ;;  %856 = vmatprep.mubr.bf16.mxu0 %v2099_v38  ;;  %v2586_v37 = vld [vmem:[#allocation11 + $0x54] ss:$8 sps:$4 sm:$0xff]   ;;  %v2584_v38 = vld [vmem:[#allocation11 + $0x50] ss:$8 sps:$4 sm:$0xff]  }
 0x101   :  { %826 = vmatprep.subr.bf16.mxu0 %v2476_v39  ;;  %v2589_v39 = vld [vmem:[#allocation11 + $0x64] ss:$8 sps:$4 sm:$0xff]  }
 0x104   :  { %827 = vmatpush1.bf16.msra.mxu0 %v2474_v40  ;;  %v3006_v40 = vmov 0  }
 0x105   :  { %828 = vmatprep.subr.bf16.mxu0 %v2479_v41  ;;  %v2587_v41 = vld [vmem:[#allocation11 + $0x60] ss:$8 sps:$4 sm:$0xff]  }
 0x108   :  { %829 = vmatpush1.bf16.msra.mxu0 %v2477_v42  ;;  %v2592_v42 = vld [vmem:[#allocation11 + $0x74] ss:$8 sps:$4 sm:$0xff]  }
 0x109   :  { %830 = vmatprep.subr.bf16.mxu0 %v2482_v43  ;;  %v2590_v43 = vld [vmem:[#allocation11 + $0x70] ss:$8 sps:$4 sm:$0xff]  }
 0x10c   :  { %831 = vmatpush1.bf16.msra.mxu0 %v2480_v44  ;;  %v2595_v44 = vld [vmem:[#allocation13 + $0x4] ss:$24 sps:$4 sm:$0xff]  }
 0x10d   :  { %832 = vmatprep.subr.bf16.mxu0 %v2485_v35  ;;  %v2596_v35 = vld [vmem:[#allocation13 + $0x10] ss:$24 sps:$4 sm:$0xff]  }
 0x110   :  { %833 = vmatpush1.bf16.msra.mxu0 %v2483_v45  ;;  %v2598_v45 = vld [vmem:[#allocation13 + $0x14] ss:$24 sps:$4 sm:$0xff]  }
 0x111   :  { %834 = vmatprep.subr.bf16.mxu0 %v2488_v46  ;;  %v2602_v46 = vld [vmem:[#allocation13 + $0x40] ss:$24 sps:$4 sm:$0xff]  }
 0x114   :  { %835 = vmatpush1.bf16.msra.mxu0 %v2486_v47  ;;  %v2604_v47 = vld [vmem:[#allocation13 + $0x44] ss:$24 sps:$4 sm:$0xff]  }
 0x115   :  { %836 = vmatprep.subr.bf16.mxu0 %v2491_v48  ;;  %v2608_v48 = vld [vmem:[#allocation13 + $0x70] ss:$24 sps:$4 sm:$0xff]  }
 0x118   :  { %837 = vmatpush1.bf16.msra.mxu0 %v2489_v49  ;;  %v2610_v49 = vld [vmem:[#allocation13 + $0x74] ss:$24 sps:$4 sm:$0xff]  }
 0x119   :  { %838 = vmatprep.subr.bf16.mxu0 %v2494_v50  ;;  %v2614_v50 = vld [vmem:[#allocation13 + $0xa0] ss:$24 sps:$4 sm:$0xff]  }
 0x11c   :  { %839 = vmatpush1.bf16.msra.mxu0 %v2492_v51  ;;  %v2616_v51 = vld [vmem:[#allocation13 + $0xa4] ss:$24 sps:$4 sm:$0xff]  }
 0x11d   :  { %840 = vmatprep.subr.bf16.mxu0 %v2497_v52  ;;  %v2620_v52 = vld [vmem:[#allocation13 + $0xd0] ss:$24 sps:$4 sm:$0xff]  }
 0x120   :  { %841 = vmatpush1.bf16.msra.mxu0 %v2495_v53  ;;  %v2622_v53 = vld [vmem:[#allocation13 + $0xd4] ss:$24 sps:$4 sm:$0xff]  }
 0x121   :  { %842 = vmatprep.subr.bf16.mxu0 %v2500_v54  ;;  %v2626_v54 = vld [vmem:[#allocation13 + $0x100] ss:$24 sps:$4 sm:$0xff]  }
 0x124   :  { %843 = vmatpush1.bf16.msra.mxu0 %v2498_v55  ;;  %v2628_v55 = vld [vmem:[#allocation13 + $0x104] ss:$24 sps:$4 sm:$0xff]  }
 0x125   :  { %844 = vmatprep.subr.bf16.mxu0 %v2503_v56  ;;  %v2632_v56 = vld [vmem:[#allocation13 + $0x130] ss:$24 sps:$4 sm:$0xff]  }
 0x128   :  { %845 = vmatpush1.bf16.msra.mxu0 %v2501_v57  ;;  %v2634_v57 = vld [vmem:[#allocation13 + $0x134] ss:$24 sps:$4 sm:$0xff]  }
 0x129   :  { %846 = vmatprep.subr.bf16.mxu0 %v2506_v58  ;;  %v2638_v58 = vld [vmem:[#allocation13 + $0x160] ss:$24 sps:$4 sm:$0xff]  }
 0x12c   :  { %847 = vmatpush1.bf16.msra.mxu0 %v2504_v59  ;;  %v2640_v59 = vld [vmem:[#allocation13 + $0x164] ss:$24 sps:$4 sm:$0xff]  }
 0x12d   :  { %848 = vmatprep.subr.bf16.mxu0 %v2509_v60  ;;  %v2644_v60 = vld [vmem:[#allocation13 + $0x190] ss:$24 sps:$4 sm:$0xff]  }
 0x130   :  { %849 = vmatpush1.bf16.msra.mxu0 %v2507_v61  ;;  %v2646_v61 = vld [vmem:[#allocation13 + $0x194] ss:$24 sps:$4 sm:$0xff]  }
 0x131   :  { %850 = vmatprep.subr.bf16.mxu0 %v2512_v62  ;;  %v2650_v62 = vld [vmem:[#allocation13 + $0x1c0] ss:$24 sps:$4 sm:$0xff]  }
 0x134   :  { %851 = vmatpush1.bf16.msra.mxu0 %v2510_v63  ;;  %v2652_v63 = vld [vmem:[#allocation13 + $0x1c4] ss:$24 sps:$4 sm:$0xff]  }
 0x135   :  { %852 = vmatprep.subr.bf16.mxu0 %v2515_v0  ;;  %v2656_v0 = vld [vmem:[#allocation13 + $0x1f0] ss:$24 sps:$4 sm:$0xff]  }
 0x138   :  { %853 = vmatpush1.bf16.msra.mxu0 %v2513_v1  ;;  %v2658_v1 = vld [vmem:[#allocation13 + $0x1f4] ss:$24 sps:$4 sm:$0xff]  }
 0x139   :  { %854 = vmatprep.subr.bf16.mxu0 %v2518_v2  ;;  %v2662_v2 = vld [vmem:[#allocation13 + $0x220] ss:$24 sps:$4 sm:$0xff]  }
 0x13c   :  { %855 = vmatpush1.bf16.msra.mxu0 %v2516_v3  ;;  %v2664_v3 = vld [vmem:[#allocation13 + $0x224] ss:$24 sps:$4 sm:$0xff]  }
 0x13d   :  { %1964 = vmatprep.subr.bf16.mxu0 %v2598_v45  ;;  %v2647_v45 = vld [vmem:[#allocation13 + $0x1b0] ss:$24 sps:$4 sm:$0xff]  }
 0x13f   :  { %857 = vmatmul.mubr.bf16.vlgmr.msra.gmra.mrb[0].mxu0 %v2098_v4  ;;  %v2668_v4 = vld [vmem:[#allocation13 + $0x250] ss:$24 sps:$4 sm:$0xff]  }
 0x140   :  { %1965 = vmatpush1.bf16.msra.mxu0 %v2596_v35  ;;  %v2649_v35 = vld [vmem:[#allocation13 + $0x1b4] ss:$24 sps:$4 sm:$0xff]  }
 0x141   :  { %1966 = vmatprep.subr.bf16.mxu0 %v2604_v47  ;;  %v2653_v47 = vld [vmem:[#allocation13 + $0x1e0] ss:$24 sps:$4 sm:$0xff]  }
 0x144   :  { %1967 = vmatpush1.bf16.msra.mxu0 %v2602_v46  ;;  %v2655_v46 = vld [vmem:[#allocation13 + $0x1e4] ss:$24 sps:$4 sm:$0xff]  }
 0x145   :  { %1968 = vmatprep.subr.bf16.mxu0 %v2610_v49  ;;  %v2659_v49 = vld [vmem:[#allocation13 + $0x210] ss:$24 sps:$4 sm:$0xff]  }
 0x148   :  { %1969 = vmatpush1.bf16.msra.mxu0 %v2608_v48  ;;  %v2661_v48 = vld [vmem:[#allocation13 + $0x214] ss:$24 sps:$4 sm:$0xff]  }
 0x149   :  { %1970 = vmatprep.subr.bf16.mxu0 %v2616_v51  ;;  %v2665_v51 = vld [vmem:[#allocation13 + $0x240] ss:$24 sps:$4 sm:$0xff]  }
 0x14c   :  { %1971 = vmatpush1.bf16.msra.mxu0 %v2614_v50  ;;  %v2667_v50 = vld [vmem:[#allocation13 + $0x244] ss:$24 sps:$4 sm:$0xff]  }
 0x14d   :  { %1972 = vmatprep.subr.bf16.mxu0 %v2622_v53  ;;  %v2671_v53 = vld [vmem:[#allocation13 + $0x270] ss:$24 sps:$4 sm:$0xff]  }
 0x150   :  { %1973 = vmatpush1.bf16.msra.mxu0 %v2620_v52  ;;  %v2673_v52 = vld [vmem:[#allocation13 + $0x274] ss:$24 sps:$4 sm:$0xff]  }
 0x151   :  { %1974 = vmatprep.subr.bf16.mxu0 %v2628_v55  ;;  %v2677_v55 = vld [vmem:[#allocation13 + $0x2a0] ss:$24 sps:$4 sm:$0xff]  }
 0x154   :  { %1975 = vmatpush1.bf16.msra.mxu0 %v2626_v54  ;;  %v2679_v54 = vld [vmem:[#allocation13 + $0x2a4] ss:$24 sps:$4 sm:$0xff]  }
 0x155   :  { %1976 = vmatprep.subr.bf16.mxu0 %v2634_v57  ;;  %v2680_v57 = vld [vmem:[#allocation13 + $0x2b0] ss:$24 sps:$4 sm:$0xff]  }
 0x158   :  { %1977 = vmatpush1.bf16.msra.mxu0 %v2632_v56  ;;  %v2682_v56 = vld [vmem:[#allocation13 + $0x2b4] ss:$24 sps:$4 sm:$0xff]  }
 0x159   :  { %1978 = vmatprep.subr.bf16.mxu0 %v2640_v59  ;;  %v2683_v59 = vld [vmem:[#allocation13 + $0x2d0] ss:$24 sps:$4 sm:$0xff]  }
 0x15c   :  { %1979 = vmatpush1.bf16.msra.mxu0 %v2638_v58  ;;  %v2685_v58 = vld [vmem:[#allocation13 + $0x2d4] ss:$24 sps:$4 sm:$0xff]  }
 0x15d   :  { %1980 = vmatprep.subr.bf16.mxu0 %v2646_v61  ;;  %v2686_v61 = vld [vmem:[#allocation13 + $0x2e0] ss:$24 sps:$4 sm:$0xff]  }
 0x160   :  { %1981 = vmatpush1.bf16.msra.mxu0 %v2644_v60  ;;  %v2688_v60 = vld [vmem:[#allocation13 + $0x2e4] ss:$24 sps:$4 sm:$0xff]  }
 0x161   :  { %1982 = vmatprep.subr.bf16.mxu0 %v2652_v63  ;;  %v1137_v63 = vld [vmem:[%s3256_s6] sm:$0x3]  ;;  %s3007_s6 = smov [#allocation15]  }
 0x162   :  { %s2065_s30 = sshll.u32 %s3007_s6, 4  ;;  %s2066_s30 = int_to_ptr.vmem [resolvable:$true] %s2065_s30 }
 0x163   :  { %s2917_s15 = scalar_lea.vmem %s2066_s30, 128  ;;  %p2922_p1 = scmp.lt.s32.totalorder %s2066_s30, %s2066_s30 }
 0x164   :  { %1983 = vmatpush1.bf16.msra.mxu0 %v2650_v62  ;;  %v2691_v62 = vld [vmem:[#allocation13 + $0xc] ss:$24 sps:$4 sm:$0xff]   ;;  %p2918_p0 = scmp.ne.s32.totalorder %s2066_s30, %s2917_s15  ;;  %p2923_p2 = scmp.lt.s32.totalorder %s2917_s15, %s2917_s15 }
 0x165   :  { %1984 = vmatprep.subr.bf16.mxu0 %v2658_v1  ;;  %v1146_v1 = vrot.slane %v1137_v63, %v3186_v14 }
 0x166   :  { %p2924_p3 = por %p2923_p2, %p2922_p1 }
 0x168   :  { %1985 = vmatpush1.bf16.msra.mxu0 %v2656_v0  ;;  %v1142_v0 = vrot.slane %v1137_v63, %v3183_v12  ;;  %p2925_p4 = pnand %p2924_p3, %p2918_p0 }
 0x169   :  { %1986 = vmatprep.subr.bf16.mxu0 %v2664_v3 }
 0x16c   :  { %1987 = vmatpush1.bf16.msra.mxu0 %v2662_v2 }
 0x16d   :  { %1988 = vmatprep.subr.bf16.mxu0 %v2670_v5 }
 0x170   :  { %1989 = vmatpush1.bf16.msra.mxu0 %v2668_v4 }
 0x171   :  { %1990 = vmatprep.subr.bf16.mxu0 %v2676_v7 }
 0x174   :  { %1991 = vmatpush1.bf16.msra.mxu0 %v2674_v6 }
 0x175   :  { %1992 = vmatprep.subr.bf16.mxu0 %v2682_v56 }
 0x178   :  { %1993 = vmatpush1.bf16.msra.mxu0 %v2680_v57 }
 0x179   :  { %1994 = vmatprep.subr.bf16.mxu0 %v2688_v60 }
 0x17c   :  { %1995 = vmatpush1.bf16.msra.mxu0 %v2686_v61 }
 0x212   :  { %v858_v17 = vpop.f32.mrb[0].mxu0 }
 0x213   :  { %v2346_v18 = vadd.f32 %v858_v17, %v234_v15  ;;  %v860_v19 = vpop.f32.mrb[1].mxu0 }
 0x214   :  { %v2347_v20 = vadd.f32 %v860_v19, %v238_v16  ;;  %v862_v21 = vpop.f32.mrb[2].mxu0 }
 0x215   :  { %v865_v22 = vmax.f32 %v2346_v18, 0.0  ;;  %v863_v23 = vpop.f32.mrb[3].mxu0 }
 0x216   :  { %v866_v24 = vmax.f32 %v2347_v20, 0.0 }
 0x217   :  { %v867_v27 = vpack.c.bf16 %v865_v22, %v865_v22  ;;  %v1117_v22 = vld [vmem:[%s3259_s9] sm:$0xff] }
 0x218   :  { %v868_v25 = vpack.c.bf16 %v866_v24, %v866_v24 }
 0x21a   :  { %1105 = vmatprep.mubr.bf16.mxu1 %v868_v25 }
 0x21b   :  { %1106 = vmatmul.mubr.bf16.vlgmr.msra.gmra.mrb[0].mxu1 %v867_v27 }
 0x21c   :  { %1230 = vmatpush1.bf16.msra.mxu1 %v2569_v26  ;;  %1261 = vmatprep.mubr.bf16.mxu1 %v3006_v40  ;;  %v2593_v26 = vld [vmem:[#allocation13] ss:$24 sps:$4 sm:$0xff]  }
 0x21d   :  { %1231 = vmatprep.subr.bf16.mxu1 %v2574_v28  ;;  %v2601_v28 = vld [vmem:[#allocation13 + $0x34] ss:$24 sps:$4 sm:$0xff]   ;;  %v2629_v40 = vld [vmem:[#allocation13 + $0x120] ss:$24 sps:$4 sm:$0xff]  }
 0x220   :  { %1232 = vmatpush1.bf16.msra.mxu1 %v2572_v29  ;;  %v2599_v29 = vld [vmem:[#allocation13 + $0x30] ss:$24 sps:$4 sm:$0xff]  }
 0x221   :  { %1233 = vmatprep.subr.bf16.mxu1 %v2577_v30  ;;  %v2607_v30 = vld [vmem:[#allocation13 + $0x64] ss:$24 sps:$4 sm:$0xff]  }
 0x224   :  { %1234 = vmatpush1.bf16.msra.mxu1 %v2575_v31  ;;  %v2605_v31 = vld [vmem:[#allocation13 + $0x60] ss:$24 sps:$4 sm:$0xff]  }
 0x225   :  { %1235 = vmatprep.subr.bf16.mxu1 %v2580_v32  ;;  %v2613_v32 = vld [vmem:[#allocation13 + $0x94] ss:$24 sps:$4 sm:$0xff]  }
 0x228   :  { %1236 = vmatpush1.bf16.msra.mxu1 %v2578_v33  ;;  %v2611_v33 = vld [vmem:[#allocation13 + $0x90] ss:$24 sps:$4 sm:$0xff]  }
 0x229   :  { %1237 = vmatprep.subr.bf16.mxu1 %v2583_v34  ;;  %v2619_v34 = vld [vmem:[#allocation13 + $0xc4] ss:$24 sps:$4 sm:$0xff]  }
 0x22c   :  { %1238 = vmatpush1.bf16.msra.mxu1 %v2581_v36  ;;  %v2617_v36 = vld [vmem:[#allocation13 + $0xc0] ss:$24 sps:$4 sm:$0xff]  }
 0x22d   :  { %1239 = vmatprep.subr.bf16.mxu1 %v2586_v37  ;;  %v2625_v37 = vld [vmem:[#allocation13 + $0xf4] ss:$24 sps:$4 sm:$0xff]  }
 0x230   :  { %1240 = vmatpush1.bf16.msra.mxu1 %v2584_v38  ;;  %v2623_v38 = vld [vmem:[#allocation13 + $0xf0] ss:$24 sps:$4 sm:$0xff]  }
 0x231   :  { %1241 = vmatprep.subr.bf16.mxu1 %v2589_v39  ;;  %v2631_v39 = vld [vmem:[#allocation13 + $0x124] ss:$24 sps:$4 sm:$0xff]  }
 0x234   :  { %1242 = vmatpush1.bf16.msra.mxu1 %v2587_v41  ;;  %v2637_v41 = vld [vmem:[#allocation13 + $0x154] ss:$24 sps:$4 sm:$0xff]  }
 0x235   :  { %1243 = vmatprep.subr.bf16.mxu1 %v2592_v42  ;;  %v2635_v42 = vld [vmem:[#allocation13 + $0x150] ss:$24 sps:$4 sm:$0xff]  }
 0x238   :  { %1244 = vmatpush1.bf16.msra.mxu1 %v2590_v43  ;;  %v2643_v43 = vld [vmem:[#allocation13 + $0x184] ss:$24 sps:$4 sm:$0xff]  }
 0x239   :  { %1882 = vmatprep.subr.bf16.mxu1 %v2595_v44  ;;  %v2641_v44 = vld [vmem:[#allocation13 + $0x180] ss:$24 sps:$4 sm:$0xff]  }
 0x2ee   :  { %v1107_v13 = vpop.f32.mrb[0].mxu1 }
 0x2ef   :  { %v1108_v15 = vadd.f32 %v1107_v13, %v906_v9  ;;  %v1109_v16 = vpop.f32.mrb[1].mxu1  ;;  %v2689_v13 = vld [vmem:[#allocation13 + $0x8] ss:$24 sps:$4 sm:$0xff]  }
 0x2f0   :  { %v1110_v17 = vadd.f32 %v1109_v16, %v910_v10  ;;  %v1111_v18 = vpop.f32.mrb[2].mxu1  ;;  %v2694_v16 = vld [vmem:[#allocation13 + $0x3c] ss:$24 sps:$4 sm:$0xff]  }
 0x2f1   :  { %2047 = vst [vmem:[#allocation15] sm:$0xff] %v1108_v15  ;;  %v1112_v19 = vpop.f32.mrb[3].mxu1  ;;  %v2697_v18 = vld [vmem:[#allocation13 + $0x6c] ss:$24 sps:$4 sm:$0xff]  }
 0x2f2   :  { %v1114_v20 = vmul.f32 0.5, %v1110_v17  ;;  %2048 = vst [vmem:[#allocation17] sm:$0xff] %v1110_v17  ;;  %v2692_v17 = vld [vmem:[#allocation13 + $0x38] ss:$24 sps:$4 sm:$0xff]   ;;  %v2695_v19 = vld [vmem:[#allocation13 + $0x68] ss:$24 sps:$4 sm:$0xff]  }
 0x2f4   :  { %v1115_v21 = vmul.f32 1.442695, %v1114_v20  ;;  %v2700_v20 = vld [vmem:[#allocation13 + $0x9c] ss:$24 sps:$4 sm:$0xff]  }
 0x2f6   :  { %2737 = vpow2.f32 %v1115_v21  ;;  %v2698_v21 = vld [vmem:[#allocation13 + $0x98] ss:$24 sps:$4 sm:$0xff]  }
 0x300   :  { %v2738_v23 = vpop.eup %2737 }
 0x301   :  { %v1118_v24 = vmul.f32 %v2738_v23, %v1117_v22  ;;  %v2703_v22 = vld [vmem:[#allocation13 + $0xcc] ss:$24 sps:$4 sm:$0xff]   ;;  %v2701_v23 = vld [vmem:[#allocation13 + $0xc8] ss:$24 sps:$4 sm:$0xff]  }
 0x303   :  { %v1119_v25 = vadd.f32 %v1118_v24, %v1108_v15  ;;  %v2706_v24 = vld [vmem:[#allocation13 + $0xfc] ss:$24 sps:$4 sm:$0xff]  }
 0x305   :  { %v1120_v27 = vpack.c.bf16 %v1119_v25, %v1119_v25  ;;  %v2704_v25 = vld [vmem:[#allocation13 + $0xf8] ss:$24 sps:$4 sm:$0xff]  }
 0x307   :  { %1262 = vmatmul.mubr.bf16.vlgmr.msra.gmra.mrb[4].mxu1 %v1120_v27  ;;  %v2707_v27 = vld [vmem:[#allocation13 + $0x128] ss:$24 sps:$4 sm:$0xff]  }
 0x308   :  { %1883 = vmatpush1.bf16.msra.mxu1 %v2593_v26  ;;  %v2709_v26 = vld [vmem:[#allocation13 + $0x12c] ss:$24 sps:$4 sm:$0xff]  }
 0x309   :  { %1884 = vmatprep.subr.bf16.mxu1 %v2601_v28  ;;  %v2712_v28 = vld [vmem:[#allocation13 + $0x15c] ss:$24 sps:$4 sm:$0xff]  }
 0x30c   :  { %1885 = vmatpush1.bf16.msra.mxu1 %v2599_v29  ;;  %v2710_v29 = vld [vmem:[#allocation13 + $0x158] ss:$24 sps:$4 sm:$0xff]  }
 0x30d   :  { %1886 = vmatprep.subr.bf16.mxu1 %v2607_v30  ;;  %v2715_v30 = vld [vmem:[#allocation13 + $0x18c] ss:$24 sps:$4 sm:$0xff]  }
 0x310   :  { %1887 = vmatpush1.bf16.msra.mxu1 %v2605_v31  ;;  %v2713_v31 = vld [vmem:[#allocation13 + $0x188] ss:$24 sps:$4 sm:$0xff]  }
 0x311   :  { %1888 = vmatprep.subr.bf16.mxu1 %v2613_v32  ;;  %v2718_v32 = vld [vmem:[#allocation13 + $0x1bc] ss:$24 sps:$4 sm:$0xff]  }
 0x314   :  { %1889 = vmatpush1.bf16.msra.mxu1 %v2611_v33  ;;  %v2716_v33 = vld [vmem:[#allocation13 + $0x1b8] ss:$24 sps:$4 sm:$0xff]  }
 0x315   :  { %1890 = vmatprep.subr.bf16.mxu1 %v2619_v34  ;;  %v2721_v34 = vld [vmem:[#allocation13 + $0x1ec] ss:$24 sps:$4 sm:$0xff]  }
 0x318   :  { %1891 = vmatpush1.bf16.msra.mxu1 %v2617_v36  ;;  %v2719_v36 = vld [vmem:[#allocation13 + $0x1e8] ss:$24 sps:$4 sm:$0xff]  }
 0x319   :  { %1892 = vmatprep.subr.bf16.mxu1 %v2625_v37  ;;  %v2724_v37 = vld [vmem:[#allocation13 + $0x21c] ss:$24 sps:$4 sm:$0xff]  }
 0x31c   :  { %1893 = vmatpush1.bf16.msra.mxu1 %v2623_v38  ;;  %v2722_v38 = vld [vmem:[#allocation13 + $0x218] ss:$24 sps:$4 sm:$0xff]  }
 0x31d   :  { %1894 = vmatprep.subr.bf16.mxu1 %v2631_v39  ;;  %v2727_v39 = vld [vmem:[#allocation13 + $0x24c] ss:$24 sps:$4 sm:$0xff]  }
 0x320   :  { %1895 = vmatpush1.bf16.msra.mxu1 %v2629_v40  ;;  %v2725_v40 = vld [vmem:[#allocation13 + $0x248] ss:$24 sps:$4 sm:$0xff]  }
 0x321   :  { %1896 = vmatprep.subr.bf16.mxu1 %v2637_v41  ;;  %v2730_v41 = vld [vmem:[#allocation13 + $0x27c] ss:$24 sps:$4 sm:$0xff]  }
 0x324   :  { %1897 = vmatpush1.bf16.msra.mxu1 %v2635_v42  ;;  %v2728_v42 = vld [vmem:[#allocation13 + $0x278] ss:$24 sps:$4 sm:$0xff]  }
 0x325   :  { %1898 = vmatprep.subr.bf16.mxu1 %v2643_v43  ;;  %v2733_v43 = vld [vmem:[#allocation13 + $0x2ac] ss:$24 sps:$4 sm:$0xff]  }
 0x328   :  { %1899 = vmatpush1.bf16.msra.mxu1 %v2641_v44  ;;  %v2731_v44 = vld [vmem:[#allocation13 + $0x2a8] ss:$24 sps:$4 sm:$0xff]  }
 0x329   :  { %1900 = vmatprep.subr.bf16.mxu1 %v2649_v35  ;;  %v2736_v35 = vld [vmem:[#allocation13 + $0x2dc] ss:$24 sps:$4 sm:$0xff]  }
 0x32c   :  { %1901 = vmatpush1.bf16.msra.mxu1 %v2647_v45  ;;  %v2734_v45 = vld [vmem:[#allocation13 + $0x2d8] ss:$24 sps:$4 sm:$0xff]  }
 0x32d   :  { %1902 = vmatprep.subr.bf16.mxu1 %v2655_v46 }
 0x330   :  { %1903 = vmatpush1.bf16.msra.mxu1 %v2653_v47 }
 0x331   :  { %1904 = vmatprep.subr.bf16.mxu1 %v2661_v48 }
 0x334   :  { %1905 = vmatpush1.bf16.msra.mxu1 %v2659_v49 }
 0x335   :  { %1906 = vmatprep.subr.bf16.mxu1 %v2667_v50 }
 0x338   :  { %1907 = vmatpush1.bf16.msra.mxu1 %v2665_v51 }
 0x339   :  { %1908 = vmatprep.subr.bf16.mxu1 %v2673_v52 }
 0x33c   :  { %1909 = vmatpush1.bf16.msra.mxu1 %v2671_v53 }
 0x33d   :  { %1910 = vmatprep.subr.bf16.mxu1 %v2679_v54 }
 0x340   :  { %1911 = vmatpush1.bf16.msra.mxu1 %v2677_v55 }
 0x341   :  { %1912 = vmatprep.subr.bf16.mxu1 %v2685_v58 }
 0x344   :  { %1913 = vmatpush1.bf16.msra.mxu1 %v2683_v59 }
 0x345   :  { %1923 = vmatprep.subr.bf16.mxu1 %v2691_v62 }
 0x3da   :  { %v1263_v2 = vpop.f32.mrb[4].mxu1 }
 0x3db   :  { %v1264_v3 = vadd.f32 %v1263_v2, %v1142_v0  ;;  %v1265_v4 = vpop.f32.mrb[5].mxu1 }
 0x3dc   :  { %v1266_v5 = vadd.f32 %v1265_v4, %v1146_v1  ;;  %v1267_v6 = vpop.f32.mrb[6].mxu1 }
 0x3dd   :  { %v1270_v7 = vmax.f32 %v1264_v3, 0.0  ;;  %v1268_v8 = vpop.f32.mrb[7].mxu1 }
 0x3de   :  { %v1271_v9 = vmax.f32 %v1266_v5, 0.0 }
 0x3df   :  { %v3200_v15 = vpack.c.bf16 %v1270_v7, %v1270_v7 }
 0x3e0   :  { %v1273_v10 = vpack.c.bf16 %v1271_v9, %v1271_v9 }
 0x3e2   :  { %1914 = vmatprep.mubr.bf16.mxu1 %v1273_v10  ;;  %1996 = vmatprep.mubr.bf16.mxu0 %v1273_v10 }
 0x3e3   :  { %1915 = vmatmul.mubr.bf16.vlgmr.msra.gmra.mrb[8].mxu1 %v3200_v15  ;;  %1997 = vmatmul.mubr.bf16.vlgmr.msra.gmra.mrb[4].mxu0 %v3200_v15 }
 0x3e4   :  { %1924 = vmatpush1.bf16.msra.mxu1 %v2689_v13  ;;  %1955 = vmatprep.mubr.bf16.mxu1 %v1273_v10 }
 0x3e5   :  { %1925 = vmatprep.subr.bf16.mxu1 %v2694_v16 }
 0x3e8   :  { %1926 = vmatpush1.bf16.msra.mxu1 %v2692_v17 }
 0x3e9   :  { %1927 = vmatprep.subr.bf16.mxu1 %v2697_v18 }
 0x3ec   :  { %1928 = vmatpush1.bf16.msra.mxu1 %v2695_v19 }
 0x3ed   :  { %1929 = vmatprep.subr.bf16.mxu1 %v2700_v20 }
 0x3f0   :  { %1930 = vmatpush1.bf16.msra.mxu1 %v2698_v21 }
 0x3f1   :  { %1931 = vmatprep.subr.bf16.mxu1 %v2703_v22 }
 0x3f4   :  { %1932 = vmatpush1.bf16.msra.mxu1 %v2701_v23 }
 0x3f5   :  { %1933 = vmatprep.subr.bf16.mxu1 %v2706_v24 }
 0x3f8   :  { %1934 = vmatpush1.bf16.msra.mxu1 %v2704_v25 }
 0x3f9   :  { %1935 = vmatprep.subr.bf16.mxu1 %v2709_v26 }
 0x3fc   :  { %1936 = vmatpush1.bf16.msra.mxu1 %v2707_v27 }
 0x3fd   :  { %1937 = vmatprep.subr.bf16.mxu1 %v2712_v28 }
 0x400   :  { %1938 = vmatpush1.bf16.msra.mxu1 %v2710_v29 }
 0x401   :  { %1939 = vmatprep.subr.bf16.mxu1 %v2715_v30 }
 0x404   :  { %1940 = vmatpush1.bf16.msra.mxu1 %v2713_v31 }
 0x405   :  { %1941 = vmatprep.subr.bf16.mxu1 %v2718_v32 }
 0x408   :  { %1942 = vmatpush1.bf16.msra.mxu1 %v2716_v33 }
 0x409   :  { %1943 = vmatprep.subr.bf16.mxu1 %v2721_v34 }
 0x40c   :  { %1944 = vmatpush1.bf16.msra.mxu1 %v2719_v36 }
 0x40d   :  { %1945 = vmatprep.subr.bf16.mxu1 %v2724_v37 }
 0x410   :  { %1946 = vmatpush1.bf16.msra.mxu1 %v2722_v38 }
 0x411   :  { %1947 = vmatprep.subr.bf16.mxu1 %v2727_v39 }
 0x414   :  { %1948 = vmatpush1.bf16.msra.mxu1 %v2725_v40 }
 0x415   :  { %1949 = vmatprep.subr.bf16.mxu1 %v2730_v41 }
 0x418   :  { %1950 = vmatpush1.bf16.msra.mxu1 %v2728_v42 }
 0x419   :  { %1951 = vmatprep.subr.bf16.mxu1 %v2733_v43 }
 0x41c   :  { %1952 = vmatpush1.bf16.msra.mxu1 %v2731_v44 }
 0x41d   :  { %1953 = vmatprep.subr.bf16.mxu1 %v2736_v35 }
 0x420   :  { %1954 = vmatpush1.bf16.msra.mxu1 %v2734_v45 }
 0x423   :  { %1956 = vmatmul.mubr.bf16.vlgmr.msra.gmra.mrb[12].mxu1 %v3200_v15 }
 0x424   :  { %2928 = shalt.err (!%p2925_p4)
}
 0x425   :  { %s2929_s5 = scalar_lea.hbm %s3261_s11, 128 }
 0x426   :  { %p2930_p5 = scmp.ne.s32.totalorder %s3261_s11, %s2929_s5  ;;  %p2933_p6 = scmp.lt.u32.totalorder %s2929_s5, %s3261_s11 }
 0x428   :  { %p2935_p7 = pnand %p2933_p6, %p2930_p5 }
 0x42a   :  { %2938 = shalt.err (!%p2935_p7)
}
 0x42b   :  { %2068 = dma.vmem_to_hbm [thread:$0]  %s2066_s30, 128, %s3261_s11, [#allocation16]  }
 0x42c   :  { %s3008_s21 = smov [#allocation17]  }
 0x42d   :  { %s2075_s23 = sshll.u32 %s3008_s21, 4  ;;  %s2076_s23 = int_to_ptr.vmem [resolvable:$true] %s2075_s23 }
 0x42e   :  { %s2939_s24 = scalar_lea.vmem %s2076_s23, 128  ;;  %p2944_p9 = scmp.lt.s32.totalorder %s2076_s23, %s2076_s23 }
 0x42f   :  { %p2940_p8 = scmp.ne.s32.totalorder %s2076_s23, %s2939_s24  ;;  %p2945_p10 = scmp.lt.s32.totalorder %s2939_s24, %s2939_s24 }
 0x431   :  { %p2946_p11 = por %p2945_p10, %p2944_p9 }
 0x433   :  { %p2947_p12 = pnand %p2946_p11, %p2940_p8 }
 0x435   :  { %2950 = shalt.err (!%p2947_p12)
}
 0x436   :  { %s2951_s25 = scalar_lea.hbm %s3262_s12, 128 }
 0x437   :  { %p2952_p13 = scmp.ne.s32.totalorder %s3262_s12, %s2951_s25  ;;  %p2955_p0 = scmp.lt.u32.totalorder %s2951_s25, %s3262_s12 }
 0x439   :  { %p2957_p1 = pnand %p2955_p0, %p2952_p13 }
 0x43b   :  { %2960 = shalt.err (!%p2957_p1)
}
 0x43c   :  { %2078 = dma.vmem_to_hbm [thread:$0]  %s2076_s23, 128, %s3262_s12, [#allocation16]   ;;  %v1390_v46 = vsub.s32 4, %v3180_v11  ;;  %v1370_v47 = vld [vmem:[%s3258_s8] sm:$0x3f]  ;;  %v1394_v48 = vsub.s32 5, %v3180_v11 }
 0x43d   :  { %v1375_v49 = vrot.slane %v1370_v47, %v3183_v12  ;;  %v1379_v51 = vrot.slane %v1370_v47, %v3186_v14  ;;  %v1382_v18 = vsub.s32 2, %v3180_v11  ;;  %v1386_v19 = vsub.s32 3, %v3180_v11  ;;  %s3009_s8 = smov [#allocation14]  }
 0x43e   :  { %v1391_v50 = vrot.slane %v1370_v47, %v1390_v46  ;;  %v1395_v52 = vrot.slane %v1370_v47, %v1394_v48  ;;  %s2055_s12 = sshll.u32 %s3009_s8, 4  ;;  %s2056_s12 = int_to_ptr.vmem [resolvable:$true] %s2055_s12 }
 0x43f   :  { %v1383_v20 = vrot.slane %v1370_v47, %v1382_v18  ;;  %v1387_v21 = vrot.slane %v1370_v47, %v1386_v19  ;;  %s2961_s9 = scalar_lea.vmem %s2056_s12, 768  ;;  %p2966_p3 = scmp.lt.s32.totalorder %s2056_s12, %s2056_s12 }
 0x440   :  { %p2962_p2 = scmp.ne.s32.totalorder %s2056_s12, %s2961_s9  ;;  %p2967_p4 = scmp.lt.s32.totalorder %s2961_s9, %s2961_s9 }
 0x442   :  { %p2968_p5 = por %p2967_p4, %p2966_p3 }
 0x444   :  { %p2969_p6 = pnand %p2968_p5, %p2962_p2 }
 0x4b6   :  { %v1916_v53 = vpop.f32.mrb[8].mxu1  ;;  %v1998_v54 = vpop.f32.mrb[4].mxu0 }
 0x4b7   :  { %v1917_v55 = vadd.f32 %v1916_v53, %v1375_v49  ;;  %v1999_v56 = vadd.f32 %v1998_v54, %v1391_v50  ;;  %v1918_v57 = vpop.f32.mrb[9].mxu1  ;;  %v2000_v58 = vpop.f32.mrb[5].mxu0 }
 0x4b8   :  { %v1919_v59 = vadd.f32 %v1918_v57, %v1379_v51  ;;  %v2001_v60 = vadd.f32 %v2000_v58, %v1395_v52  ;;  %v1920_v61 = vpop.f32.mrb[10].mxu1  ;;  %v2002_v62 = vpop.f32.mrb[6].mxu0 }
 0x4b9   :  { %v2340_v63 = vmul.f32 -1.442695, %v1917_v55  ;;  %v2344_v0 = vmul.f32 -1.442695, %v1999_v56  ;;  %v1921_v1 = vpop.f32.mrb[11].mxu1  ;;  %v2003_v2 = vpop.f32.mrb[7].mxu0 }
 0x4ba   :  { %v2341_v3 = vmul.f32 -1.442695, %v1919_v59  ;;  %v2345_v12 = vmul.f32 -1.442695, %v2001_v60 }
 0x4bb   :  { %2739 = vpow2.f32 %v2340_v63 }
 0x4bc   :  { %2741 = vpow2.f32 %v2344_v0 }
 0x4bd   :  { %2743 = vpow2.f32 %v2341_v3 }
 0x4be   :  { %2745 = vpow2.f32 %v2345_v12 }
 0x4c5   :  { %v2740_v14 = vpop.eup %2739 }
 0x4c6   :  { %v2742_v4 = vpop.eup %2741  ;;  %v2023_v5 = vadd.f32 1.0, %v2740_v14 }
 0x4c7   :  { %v2744_v6 = vpop.eup %2743  ;;  %v2027_v7 = vadd.f32 1.0, %v2742_v4 }
 0x4c8   :  { %v2746_v8 = vpop.eup %2745  ;;  %2747 = vrcp.f32 %v2023_v5  ;;  %v2024_v9 = vadd.f32 1.0, %v2744_v6 }
 0x4c9   :  { %2749 = vrcp.f32 %v2027_v7  ;;  %v2028_v10 = vadd.f32 1.0, %v2746_v8 }
 0x4ca   :  { %2751 = vrcp.f32 %v2024_v9 }
 0x4cb   :  { %2753 = vrcp.f32 %v2028_v10 }
 0x4d2   :  { %v2748_v13 = vpop.eup %2747 }
 0x4d3   :  { %v2750_v15 = vpop.eup %2749  ;;  %2041 = vst [vmem:[#allocation14] sm:$0xff] %v2748_v13 }
 0x4d4   :  { %v2752_v16 = vpop.eup %2751  ;;  %2045 = vst [vmem:[#allocation14 + $0x20] sm:$0xff] %v2750_v15 }
 0x4d5   :  { %v2754_v17 = vpop.eup %2753  ;;  %2042 = vst [vmem:[#allocation14 + $0x8] sm:$0xff] %v2752_v16 }
 0x4d6   :  { %2046 = vst [vmem:[#allocation14 + $0x28] sm:$0xff] %v2754_v17 }
 0x4f6   :  { %v1957_v22 = vpop.f32.mrb[12].mxu1 }
 0x4f7   :  { %v1958_v23 = vadd.f32 %v1957_v22, %v1383_v20  ;;  %v1959_v24 = vpop.f32.mrb[13].mxu1 }
 0x4f8   :  { %v1960_v25 = vadd.f32 %v1959_v24, %v1387_v21  ;;  %v1961_v26 = vpop.f32.mrb[14].mxu1 }
 0x4f9   :  { %v2342_v27 = vmul.f32 -1.442695, %v1958_v23  ;;  %v1962_v28 = vpop.f32.mrb[15].mxu1 }
 0x4fa   :  { %v2343_v29 = vmul.f32 -1.442695, %v1960_v25 }
 0x4fb   :  { %2755 = vpow2.f32 %v2342_v27 }
 0x4fc   :  { %2757 = vpow2.f32 %v2343_v29 }
 0x505   :  { %v2756_v30 = vpop.eup %2755 }
 0x506   :  { %v2758_v31 = vpop.eup %2757  ;;  %v2025_v32 = vadd.f32 1.0, %v2756_v30 }
 0x507   :  { %v2026_v33 = vadd.f32 1.0, %v2758_v31 }
 0x508   :  { %2759 = vrcp.f32 %v2025_v32 }
 0x509   :  { %2761 = vrcp.f32 %v2026_v33 }
 0x512   :  { %v2760_v11 = vpop.eup %2759 }
 0x513   :  { %v2762_v34 = vpop.eup %2761  ;;  %2043 = vst [vmem:[#allocation14 + $0x10] sm:$0xff] %v2760_v11 }
 0x514   :  { %2044 = vst [vmem:[#allocation14 + $0x18] sm:$0xff] %v2762_v34 }
 0x515   :  { %2972 = shalt.err (!%p2969_p6)
}
 0x516   :  { %s2973_s30 = scalar_lea.hbm %s3260_s10, 768 }
 0x517   :  { %p2974_p7 = scmp.ne.s32.totalorder %s3260_s10, %s2973_s30  ;;  %p2977_p8 = scmp.lt.u32.totalorder %s2973_s30, %s3260_s10 }
 0x519   :  { %p2979_p9 = pnand %p2977_p8, %p2974_p7 }
 0x51b   :  { %2982 = shalt.err (!%p2979_p9)
}
 0x51c   :  { %2058 = dma.vmem_to_hbm [thread:$0]  %s2056_s12, 768, %s3260_s10, [#allocation4]  }
 0x51d   :  { %2991 = dma.done.wait [#allocation4], 768  }
 0x51e   :  { %2992 = vsyncadd [#allocation4], 4294966528 }
 0x51f   :  { %2993 = dma.done.wait [#allocation16], 256  }
 0x520   :  { %2994 = vsyncadd [#allocation16], 4294967040 }
 0x521   :  { %2088 = vsyncpa [#allocation3], 1 }
 0x522   :  { %2089 = vsyncpa [#allocation6], 1 }
 0x523   :  { %2090 = vsyncpa [#allocation9], 1 }
 0x524   :  { %2091 = vsyncpa [#allocation12], 1 }
 0x525   :  { %2092 = vsyncpa [#allocation4], 1 }
 0x526   :  { %2093 = vsyncpa [#allocation16], 1 }

</bundles_post_ra>
